<compile_context>
chip_gen: v5e
topology: v5e:2x2
jax: 0.10.0
libtpu: 0.0.40
codegen_flags: <defaults>
</compile_context>

<pallas_src>
import functools

import jax
import jax.numpy as jnp
import numpy as np
from jax import lax
from jax.experimental import pallas as pl
from jax.experimental.pallas import tpu as pltpu

C_SHARED = 512   # rpn_conv_shared output channels
N_SCORE = 6      # anchor_score_conv output channels (3 anchors x 2 classes)
N_BBOX = 12      # rpn_bbox_pred output channels   (3 anchors x 4 coords)
OUT_W = 128      # merged lane-dense output width: [logits 6 | probs 6 | bbox 12 | pad]
LANE = 128
SUBLANE = 8
_SWAP = (1, 0, 3, 2, 5, 4)   # swap-within-pair column permutation


def _round_up(x, mult):
    return ((x + mult - 1) // mult) * mult


def rpn_kernel(patches_ref, w1_ref, b1_ref, wh_ref, bh_ref, out_ref):
    """One M-row tile: fused conv matmul + ReLU + fused heads + pair softmax."""
    # rpn_conv_shared (3x3, padding=1) as a single matmul over K = 9*Cin.
    shared = jnp.dot(patches_ref[...], w1_ref[...],
                     preferred_element_type=jnp.float32)
    shared = jnp.maximum(shared + b1_ref[...], 0.0)            # bias + ReLU (f32)

    # Fused heads: [score | score-swapped | bbox | 0] in one 128-wide matmul.
    head = jnp.dot(shared.astype(wh_ref.dtype), wh_ref[...],
                   preferred_element_type=jnp.float32) + bh_ref[...]

    # Pairwise softmax (== softmax(dim=2) after .view(N, -1, 2)).
    logits = head[:, 0:N_SCORE]
    swapped = head[:, N_SCORE:2 * N_SCORE]
    mx = jnp.maximum(logits, swapped)
    e = jnp.exp(logits - mx)
    e_sw = jnp.exp(swapped - mx)
    probs = e * pl.reciprocal(e + e_sw, approx=True)           # divide on EUP slot

    out_ref[...] = head                                        # lane-dense store
    out_ref[:, N_SCORE:2 * N_SCORE] = probs                    # overwrite swap slot


@functools.partial(jax.jit, static_argnames=("m_tile", "compute_dtype"))
def rpn_forward(x_nchw, params, *, m_tile=256, compute_dtype=jnp.float32):
    """Mirrors Rpn.forward(feature_map) with feature_map in NCHW."""
    w1, b1, ws, bs, wb, bb = params
    n, cin, h, w = x_nchw.shape
    m = n * h * w

    # --- im2col in the wrapper: lane-dense (M_pad, K_pad) patch slab ---
    x = jnp.transpose(x_nchw, (0, 2, 3, 1))                    # NCHW -> NHWC
    xpad = jnp.pad(x, ((0, 0), (1, 1), (1, 1), (0, 0)))        # conv padding=1
    taps = [xpad[:, dy:dy + h, dx:dx + w, :]
            for dy in range(3) for dx in range(3)]              # matches w1 tap order
    patches = jnp.concatenate(taps, axis=-1).reshape(m, 9 * cin)

    k_eff = 9 * cin
    k_pad = _round_up(k_eff, LANE)
    m_pad = _round_up(m, m_tile)
    patches = jnp.pad(patches, ((0, m_pad - m), (0, k_pad - k_eff)))
    patches = patches.astype(compute_dtype)

    # --- conv weight as (K_pad, 512); both heads + swap fused into (512, 128) ---
    w1_mat = jnp.pad(w1.reshape(k_eff, C_SHARED),
                     ((0, k_pad - k_eff), (0, 0))).astype(compute_dtype)
    swap = list(_SWAP)
    pad_cols = OUT_W - 2 * N_SCORE - N_BBOX
    wh = jnp.concatenate(
        [ws, ws[:, swap], wb, jnp.zeros((C_SHARED, pad_cols), jnp.float32)],
        axis=1).astype(compute_dtype)
    bh = jnp.concatenate(
        [bs, bs[:, swap], bb, jnp.zeros((1, pad_cols), jnp.float32)], axis=1)

    grid = (m_pad // m_tile,)
    out = pl.pallas_call(
        rpn_kernel,
        out_shape=jax.ShapeDtypeStruct((m_pad, OUT_W), jnp.float32),
        grid=grid,
        in_specs=[
            pl.BlockSpec((m_tile, k_pad), lambda i: (i, 0)),      # patch row tile
            pl.BlockSpec((k_pad, C_SHARED), lambda i: (0, 0)),    # resident conv W
            pl.BlockSpec((1, C_SHARED), lambda i: (0, 0)),        # resident conv b
            pl.BlockSpec((C_SHARED, OUT_W), lambda i: (0, 0)),    # resident head W
            pl.BlockSpec((1, OUT_W), lambda i: (0, 0)),           # resident head b
        ],
        out_specs=pl.BlockSpec((m_tile, OUT_W), lambda i: (i, 0)),
        compiler_params=pltpu.CompilerParams(
            dimension_semantics=("parallel",),    # shard row tiles across TCs on v7x
            vmem_limit_bytes=64 * 1024 * 1024),
    )(patches, w1_mat, b1, wh, bh)

    out = out[:m]
    class_logits = out[:, 0:N_SCORE].reshape(n, h * w * 3, 2)
    class_probs = out[:, N_SCORE:2 * N_SCORE].reshape(n, h * w * 3, 2)
    rpn_bbox = out[:, 2 * N_SCORE:2 * N_SCORE + N_BBOX].reshape(n, h * w * 3, 4)
    return class_logits, class_probs, rpn_bbox


def init_params(key, cin):
    """Deterministic synthetic parameters (shapes follow Rpn.__init__)."""
    k1, k2, k3, k4, k5, k6 = jax.random.split(key, 6)
    # conv weight stored as (kh*kw, Cin, Cout)  (row-major over kh, kw)
    w1 = jax.random.normal(k1, (9, cin, C_SHARED), jnp.float32) * 0.05
    b1 = jax.random.normal(k2, (1, C_SHARED), jnp.float32) * 0.05
    ws = jax.random.normal(k3, (C_SHARED, N_SCORE), jnp.float32) * 0.05
    bs = jax.random.normal(k4, (1, N_SCORE), jnp.float32) * 0.05
    wb = jax.random.normal(k5, (C_SHARED, N_BBOX), jnp.float32) * 0.05
    bb = jax.random.normal(k6, (1, N_BBOX), jnp.float32) * 0.05
    return (w1, b1, ws, bs, wb, bb)


def rpn_reference(x_nchw, params):
    """Pure-JAX reference identical to the PyTorch forward."""
    w1, b1, ws, bs, wb, bb = params
    n, cin, h, w = x_nchw.shape
    x = jnp.transpose(x_nchw, (0, 2, 3, 1))
    w_hwio = w1.reshape(3, 3, cin, C_SHARED)
    shared = lax.conv_general_dilated(
        x, w_hwio, (1, 1), "SAME",
        dimension_numbers=("NHWC", "HWIO", "NHWC"),
        precision=lax.Precision.HIGHEST) + b1.reshape(1, 1, 1, -1)
    shared = jnp.maximum(shared, 0.0)
    logits = jnp.einsum("nhwc,cd->nhwd", shared, ws,
                        precision=lax.Precision.HIGHEST) + bs.reshape(1, 1, 1, -1)
    bbox = jnp.einsum("nhwc,cd->nhwd", shared, wb,
                      precision=lax.Precision.HIGHEST) + bb.reshape(1, 1, 1, -1)
    class_logits = logits.reshape(n, -1, 2)
    class_probs = jax.nn.softmax(class_logits, axis=2)
    rpn_bbox = bbox.reshape(n, -1, 4)
    return class_logits, class_probs, rpn_bbox


if __name__ == "__main__":
    key = jax.random.PRNGKey(0)
    kx, kp = jax.random.split(key)

    # config.RPN_INPUT_CHANNELS := 4 (small synthetic configuration)
    N, CIN, H, W = 2, 4, 16, 16
    x = jax.random.normal(kx, (N, CIN, H, W), jnp.float32)   # NCHW like PyTorch
    params = init_params(kp, CIN)

    outs = jax.block_until_ready(rpn_forward(x, params))
    refs = rpn_reference(x, params)
    for o, r in zip(outs, refs):
        np.testing.assert_allclose(np.asarray(o), np.asarray(r),
                                   rtol=2e-3, atol=2e-3)
    print("KERNEL_OK")
</pallas_src>

<mosaic_0001>
module attributes {stable_mosaic.version = 11 : i64} {
  func.func @rpn_kernel(%arg0: i32, %arg1: memref<256x128xf32, #tpu.memory_space<vmem>>, %arg2: memref<128x512xf32, #tpu.memory_space<vmem>>, %arg3: memref<1x512xf32, #tpu.memory_space<vmem>>, %arg4: memref<512x128xf32, #tpu.memory_space<vmem>>, %arg5: memref<1x128xf32, #tpu.memory_space<vmem>>, %arg6: memref<256x128xf32, #tpu.memory_space<vmem>>) attributes {dimension_semantics = [#tpu.dimension_semantics<parallel>], iteration_bounds = array<i64: 2>, scalar_prefetch = 0 : i64, scratch_operands = 0 : i64, tpu.core_type = #tpu.core_type<tc>, window_params = [{transform_indices = @transform_0, window_bounds = array<i64: 256, 128>}, {pipeline_mode = #tpu.pipeline_mode<synchronous>, transform_indices = @transform_1, window_bounds = array<i64: 128, 512>}, {pipeline_mode = #tpu.pipeline_mode<synchronous>, transform_indices = @transform_2, window_bounds = array<i64: 1, 512>}, {pipeline_mode = #tpu.pipeline_mode<synchronous>, transform_indices = @transform_3, window_bounds = array<i64: 512, 128>}, {pipeline_mode = #tpu.pipeline_mode<synchronous>, transform_indices = @transform_4, window_bounds = array<i64: 1, 128>}, {transform_indices = @transform_5, window_bounds = array<i64: 256, 128>}]} {
    %c0 = arith.constant 0 : index
    %c0_0 = arith.constant 0 : index
    %0 = vector.load %arg1[%c0, %c0_0] : memref<256x128xf32, #tpu.memory_space<vmem>>, vector<256x128xf32>
    %c0_1 = arith.constant 0 : index
    %c0_2 = arith.constant 0 : index
    %1 = vector.load %arg2[%c0_1, %c0_2] : memref<128x512xf32, #tpu.memory_space<vmem>>, vector<128x512xf32>
    %cst = arith.constant dense<0.000000e+00> : vector<256x512xf32>
    %2 = tpu.matmul %0, %1, %cst {dimension_numbers = #tpu.dot_dimension_numbers<[1], [0], [0], [1], [0, 0, 1, 1], [], []>} : vector<256x128xf32>, vector<128x512xf32>, vector<256x512xf32> -> vector<256x512xf32>
    %c0_3 = arith.constant 0 : index
    %c0_4 = arith.constant 0 : index
    %3 = vector.load %arg3[%c0_3, %c0_4] : memref<1x512xf32, #tpu.memory_space<vmem>>, vector<1x512xf32>
    %4 = vector.broadcast %3 : vector<1x512xf32> to vector<256x512xf32>
    %5 = arith.addf %2, %4 : vector<256x512xf32>
    %cst_5 = arith.constant 0.000000e+00 : f32
    %6 = vector.broadcast %cst_5 : f32 to vector<256x512xf32>
    %7 = arith.maximumf %5, %6 : vector<256x512xf32>
    %c0_6 = arith.constant 0 : index
    %c0_7 = arith.constant 0 : index
    %8 = vector.load %arg4[%c0_6, %c0_7] : memref<512x128xf32, #tpu.memory_space<vmem>>, vector<512x128xf32>
    %cst_8 = arith.constant dense<0.000000e+00> : vector<256x128xf32>
    %9 = tpu.matmul %7, %8, %cst_8 {dimension_numbers = #tpu.dot_dimension_numbers<[1], [0], [0], [1], [0, 0, 1, 1], [], []>} : vector<256x512xf32>, vector<512x128xf32>, vector<256x128xf32> -> vector<256x128xf32>
    %c0_9 = arith.constant 0 : index
    %c0_10 = arith.constant 0 : index
    %10 = vector.load %arg5[%c0_9, %c0_10] : memref<1x128xf32, #tpu.memory_space<vmem>>, vector<1x128xf32>
    %11 = vector.broadcast %10 : vector<1x128xf32> to vector<256x128xf32>
    %12 = arith.addf %9, %11 : vector<256x128xf32>
    %13 = vector.extract_strided_slice %12 {offsets = [0, 0], sizes = [256, 6], strides = [1, 1]} : vector<256x128xf32> to vector<256x6xf32>
    %14 = vector.extract_strided_slice %12 {offsets = [0, 6], sizes = [256, 6], strides = [1, 1]} : vector<256x128xf32> to vector<256x6xf32>
    %15 = arith.maximumf %13, %14 : vector<256x6xf32>
    %16 = arith.subf %13, %15 : vector<256x6xf32>
    %17 = math.exp %16 : vector<256x6xf32>
    %18 = arith.subf %14, %15 : vector<256x6xf32>
    %19 = math.exp %18 : vector<256x6xf32>
    %20 = arith.addf %17, %19 : vector<256x6xf32>
    %21 = tpu.reciprocal %20 {approx = true} : vector<256x6xf32> -> vector<256x6xf32>
    %22 = arith.mulf %17, %21 : vector<256x6xf32>
    %c0_11 = arith.constant 0 : index
    %c0_12 = arith.constant 0 : index
    %23 = vector.load %arg6[%c0_11, %c0_12] : memref<256x128xf32, #tpu.memory_space<vmem>>, vector<256x128xf32>
    tpu.vector_store %arg6[%c0_11, %c0_12], %12 {strides = array<i32>} : memref<256x128xf32, #tpu.memory_space<vmem>>, vector<256x128xf32>,
    %c0_13 = arith.constant 0 : index
    %c6 = arith.constant 6 : index
    %24 = vector.load %arg6[%c0_13, %c6] : memref<256x128xf32, #tpu.memory_space<vmem>>, vector<256x6xf32>
    tpu.vector_store %arg6[%c0_13, %c6], %22 {strides = array<i32>} : memref<256x128xf32, #tpu.memory_space<vmem>>, vector<256x6xf32>,
    return
  }
  func.func @transform_0(%arg0: i32) -> (i32, i32) {
    %c0_i32 = arith.constant 0 : i32
    %c0_i32_0 = arith.constant 0 : i32
    return %arg0, %c0_i32 : i32, i32
  }
  func.func @transform_1(%arg0: i32) -> (i32, i32) {
    %c0_i32 = arith.constant 0 : i32
    %c0_i32_0 = arith.constant 0 : i32
    %c0_i32_1 = arith.constant 0 : i32
    return %c0_i32, %c0_i32_0 : i32, i32
  }
  func.func @transform_2(%arg0: i32) -> (i32, i32) {
    %c0_i32 = arith.constant 0 : i32
    %c0_i32_0 = arith.constant 0 : i32
    %c0_i32_1 = arith.constant 0 : i32
    return %c0_i32, %c0_i32_0 : i32, i32
  }
  func.func @transform_3(%arg0: i32) -> (i32, i32) {
    %c0_i32 = arith.constant 0 : i32
    %c0_i32_0 = arith.constant 0 : i32
    %c0_i32_1 = arith.constant 0 : i32
    return %c0_i32, %c0_i32_0 : i32, i32
  }
  func.func @transform_4(%arg0: i32) -> (i32, i32) {
    %c0_i32 = arith.constant 0 : i32
    %c0_i32_0 = arith.constant 0 : i32
    %c0_i32_1 = arith.constant 0 : i32
    return %c0_i32, %c0_i32_0 : i32, i32
  }
  func.func @transform_5(%arg0: i32) -> (i32, i32) {
    %c0_i32 = arith.constant 0 : i32
    %c0_i32_0 = arith.constant 0 : i32
    return %arg0, %c0_i32 : i32, i32
  }
}

</mosaic_0001>

<bundles_post_ra>
// kernel: rpn_forward.1
= control target key start
LH: loop header
LB: loop body
LE: loop exit
PB: predicated region body
PF: predicated region fallthrough
CT: control target
= control target key end

     0   :  { %s2674_s18 = smov 0   ;;  %s4264_s0 = inlined_call_operand.vmem [shape: f32[512,128], index: 0, kind: input, shape index: {}]   ;;  %s4265_s1 = inlined_call_operand.vmem [shape: f32[128,512], index: 1, kind: input, shape index: {}]   ;;  %s4266_s2 = inlined_call_operand.vmem [shape: f32[1,512], index: 2, kind: input, shape index: {}]   ;;  %s4267_s3 = inlined_call_operand.vmem [shape: f32[512,128], index: 3, kind: input, shape index: {}]   ;;  %s4268_s4 = inlined_call_operand.vmem [shape: f32[1,128], index: 4, kind: input, shape index: {}]   ;;  %s4269_s5 = inlined_call_operand.vmem [shape: f32[512,128], index: 5, kind: output, shape index: {}]  }
   0x1 LB: > { %s2387_s19 = sadd.s32 4294967295, %s2640_s18   ;;  %p2391_p0 = scmp.ge.s32.totalorder %s2640_s18, 1  ;;  %s2640_s18 = sphi %s2674_s18, %s15_s18  }
   0x2   : > { %p188_p1 = scmp.lt.s32.totalorder %s2640_s18, 3 }
   0x4   : > { %p189_p2 = pnand %p2391_p0, %p188_p1 }
   0x6   : > { %192 = sbr.rel (%p189_p2) target bundleno = 1147 (0x47b), region = 40 }
   0xb   : > { %v320_v0 = vld [vmem:[%s4265_s1 + $0x1e0] sm:$0xff]  ;;  %v321_v1 = vld [vmem:[%s4265_s1 + $0x1e8] sm:$0xff]  ;;  %v322_v2 = vld [vmem:[%s4265_s1 + $0x1f0] sm:$0xff]  ;;  %s2780_s13 = sshll.u32 %s2387_s19, 5  ;;  %vm2298_vm0 = vcmask 97328  }
   0xc   : > { %334 = vmatpush.msra.mxu0 %v320_v0  ;;  %447 = vmatpush.msra.mxu1 %v321_v1  ;;  %v323_v3 = vld [vmem:[%s4265_s1 + $0x1f8] sm:$0xff]  ;;  %v316_v4 = vld [vmem:[%s4265_s1 + $0x1c0] sm:$0xff]  ;;  %v317_v5 = vld [vmem:[%s4265_s1 + $0x1c8] sm:$0xff]  ;;  %p217_p3 = scmp.lt.s32.totalorder %s2780_s13, 63 }
   0xd   : > { %560 = vmatpush.msra.mxu2 %v322_v2  ;;  %673 = vmatpush.msra.mxu3 %v323_v3  ;;  %v318_v6 = vld [vmem:[%s4265_s1 + $0x1d0] sm:$0xff]  ;;  %v319_v7 = vld [vmem:[%s4265_s1 + $0x1d8] sm:$0xff]  ;;  %v312_v8 = vld [vmem:[%s4265_s1 + $0x1a0] sm:$0xff] }
   0xe   : > { %335 = vmatpush.msra.mxu0 %v316_v4  ;;  %448 = vmatpush.msra.mxu1 %v317_v5  ;;  %v313_v9 = vld [vmem:[%s4265_s1 + $0x1a8] sm:$0xff]  ;;  %v314_v10 = vld [vmem:[%s4265_s1 + $0x1b0] sm:$0xff]  ;;  %v315_v11 = vld [vmem:[%s4265_s1 + $0x1b8] sm:$0xff]  ;;  %s4329_s13 = smov (!%p217_p3, %s2780_s13), 63 }
   0xf   : > { %561 = vmatpush.msra.mxu2 %v318_v6  ;;  %674 = vmatpush.msra.mxu3 %v319_v7  ;;  %v308_v12 = vld [vmem:[%s4265_s1 + $0x180] sm:$0xff]  ;;  %v309_v13 = vld [vmem:[%s4265_s1 + $0x188] sm:$0xff]  ;;  %v310_v14 = vld [vmem:[%s4265_s1 + $0x190] sm:$0xff]  ;;  %s2393_s11 = sshll.u32 %s4329_s13, 3  ;;  %s2642_s13 = smov 122  }
  0x10   : > { %336 = vmatpush.msra.mxu0 %v312_v8  ;;  %449 = vmatpush.msra.mxu1 %v313_v9  ;;  %v311_v15 = vld [vmem:[%s4265_s1 + $0x198] sm:$0xff]  ;;  %v304_v16 = vld [vmem:[%s4265_s1 + $0x160] sm:$0xff]  ;;  %v305_v17 = vld [vmem:[%s4265_s1 + $0x168] sm:$0xff]  ;;  %s2878_s28 = scalar_lea.vmem %s4264_s0, %s2393_s11  ;;  %s3538_s19 = scalar_lea.vmem %s4269_s5, %s2393_s11 }
  0x11   : > { %562 = vmatpush.msra.mxu2 %v314_v10  ;;  %675 = vmatpush.msra.mxu3 %v315_v11  ;;  %v306_v18 = vld [vmem:[%s4265_s1 + $0x170] sm:$0xff]  ;;  %v307_v19 = vld [vmem:[%s4265_s1 + $0x178] sm:$0xff]  ;;  %v300_v20 = vld [vmem:[%s4265_s1 + $0x140] sm:$0xff]  ;;  %s2643_s11 = smov 6  }
  0x12   : > { %337 = vmatpush.msra.mxu0 %v308_v12  ;;  %450 = vmatpush.msra.mxu1 %v309_v13  ;;  %v301_v21 = vld [vmem:[%s4265_s1 + $0x148] sm:$0xff]  ;;  %v302_v22 = vld [vmem:[%s4265_s1 + $0x150] sm:$0xff]  ;;  %v303_v23 = vld [vmem:[%s4265_s1 + $0x158] sm:$0xff] }
  0x13   : > { %563 = vmatpush.msra.mxu2 %v310_v14  ;;  %676 = vmatpush.msra.mxu3 %v311_v15  ;;  %v296_v24 = vld [vmem:[%s4265_s1 + $0x120] sm:$0xff]  ;;  %v297_v25 = vld [vmem:[%s4265_s1 + $0x128] sm:$0xff]  ;;  %v298_v26 = vld [vmem:[%s4265_s1 + $0x130] sm:$0xff] }
  0x14   : > { %338 = vmatpush.msra.mxu0 %v304_v16  ;;  %451 = vmatpush.msra.mxu1 %v305_v17  ;;  %v299_v27 = vld [vmem:[%s4265_s1 + $0x138] sm:$0xff]  ;;  %v292_v28 = vld [vmem:[%s4265_s1 + $0x100] sm:$0xff]  ;;  %v293_v29 = vld [vmem:[%s4265_s1 + $0x108] sm:$0xff] }
  0x15   : > { %564 = vmatpush.msra.mxu2 %v306_v18  ;;  %677 = vmatpush.msra.mxu3 %v307_v19  ;;  %v294_v30 = vld [vmem:[%s4265_s1 + $0x110] sm:$0xff]  ;;  %v295_v31 = vld [vmem:[%s4265_s1 + $0x118] sm:$0xff]  ;;  %v288_v32 = vld [vmem:[%s4265_s1 + $0xe0] sm:$0xff] }
  0x16   : > { %339 = vmatpush.msra.mxu0 %v300_v20  ;;  %452 = vmatpush.msra.mxu1 %v301_v21  ;;  %v289_v33 = vld [vmem:[%s4265_s1 + $0xe8] sm:$0xff]  ;;  %v290_v34 = vld [vmem:[%s4265_s1 + $0xf0] sm:$0xff]  ;;  %v291_v35 = vld [vmem:[%s4265_s1 + $0xf8] sm:$0xff] }
  0x17   : > { %565 = vmatpush.msra.mxu2 %v302_v22  ;;  %678 = vmatpush.msra.mxu3 %v303_v23  ;;  %v284_v36 = vld [vmem:[%s4265_s1 + $0xc0] sm:$0xff]  ;;  %v285_v37 = vld [vmem:[%s4265_s1 + $0xc8] sm:$0xff]  ;;  %v286_v38 = vld [vmem:[%s4265_s1 + $0xd0] sm:$0xff] }
  0x18   : > { %340 = vmatpush.msra.mxu0 %v296_v24  ;;  %453 = vmatpush.msra.mxu1 %v297_v25  ;;  %v287_v39 = vld [vmem:[%s4265_s1 + $0xd8] sm:$0xff]  ;;  %v280_v40 = vld [vmem:[%s4265_s1 + $0xa0] sm:$0xff]  ;;  %v281_v41 = vld [vmem:[%s4265_s1 + $0xa8] sm:$0xff] }
  0x19   : > { %566 = vmatpush.msra.mxu2 %v298_v26  ;;  %679 = vmatpush.msra.mxu3 %v299_v27  ;;  %v282_v42 = vld [vmem:[%s4265_s1 + $0xb0] sm:$0xff]  ;;  %v283_v43 = vld [vmem:[%s4265_s1 + $0xb8] sm:$0xff]  ;;  %v276_v44 = vld [vmem:[%s4265_s1 + $0x80] sm:$0xff] }
  0x1a   : > { %341 = vmatpush.msra.mxu0 %v292_v28  ;;  %454 = vmatpush.msra.mxu1 %v293_v29  ;;  %v277_v45 = vld [vmem:[%s4265_s1 + $0x88] sm:$0xff]  ;;  %v278_v46 = vld [vmem:[%s4265_s1 + $0x90] sm:$0xff]  ;;  %v279_v47 = vld [vmem:[%s4265_s1 + $0x98] sm:$0xff] }
  0x1b   : > { %567 = vmatpush.msra.mxu2 %v294_v30  ;;  %680 = vmatpush.msra.mxu3 %v295_v31  ;;  %v272_v48 = vld [vmem:[%s4265_s1 + $0x60] sm:$0xff]  ;;  %v273_v49 = vld [vmem:[%s4265_s1 + $0x68] sm:$0xff]  ;;  %v274_v50 = vld [vmem:[%s4265_s1 + $0x70] sm:$0xff] }
  0x1c   : > { %342 = vmatpush.msra.mxu0 %v288_v32  ;;  %455 = vmatpush.msra.mxu1 %v289_v33  ;;  %v275_v51 = vld [vmem:[%s4265_s1 + $0x78] sm:$0xff]  ;;  %v268_v52 = vld [vmem:[%s4265_s1 + $0x40] sm:$0xff]  ;;  %v269_v53 = vld [vmem:[%s4265_s1 + $0x48] sm:$0xff] }
  0x1d   : > { %568 = vmatpush.msra.mxu2 %v290_v34  ;;  %681 = vmatpush.msra.mxu3 %v291_v35  ;;  %v270_v54 = vld [vmem:[%s4265_s1 + $0x50] sm:$0xff]  ;;  %v271_v55 = vld [vmem:[%s4265_s1 + $0x58] sm:$0xff]  ;;  %v264_v56 = vld [vmem:[%s4265_s1 + $0x20] sm:$0xff] }
  0x1e   : > { %343 = vmatpush.msra.mxu0 %v284_v36  ;;  %456 = vmatpush.msra.mxu1 %v285_v37  ;;  %v265_v57 = vld [vmem:[%s4265_s1 + $0x28] sm:$0xff]  ;;  %v266_v58 = vld [vmem:[%s4265_s1 + $0x30] sm:$0xff]  ;;  %v267_v59 = vld [vmem:[%s4265_s1 + $0x38] sm:$0xff] }
  0x1f   : > { %569 = vmatpush.msra.mxu2 %v286_v38  ;;  %682 = vmatpush.msra.mxu3 %v287_v39  ;;  %v260_v60 = vld [vmem:[%s4265_s1] sm:$0xff]  ;;  %v261_v61 = vld [vmem:[%s4265_s1 + $0x8] sm:$0xff]  ;;  %v262_v62 = vld [vmem:[%s4265_s1 + $0x10] sm:$0xff] }
  0x20   : > { %344 = vmatpush.msra.mxu0 %v280_v40  ;;  %457 = vmatpush.msra.mxu1 %v281_v41  ;;  %v263_v63 = vld [vmem:[%s4265_s1 + $0x18] sm:$0xff]  ;;  %v228_v0 = vld [vmem:[%s2878_s28] sm:$0xff]  ;;  %v960_v5 = vld [vmem:[%s4267_s3 + $0x170] sm:$0xff] }
  0x21   : > { %570 = vmatpush.msra.mxu2 %v282_v42  ;;  %683 = vmatpush.msra.mxu3 %v283_v43  ;;  %v961_v1 = vld [vmem:[%s4267_s3 + $0x178] sm:$0xff]  ;;  %v928_v6 = vld [vmem:[%s4267_s3 + $0x70] sm:$0xff]  ;;  %v959_v9 = vld [vmem:[%s4267_s3 + $0x168] sm:$0xff] }
  0x22   : > { %345 = vmatpush.msra.mxu0 %v276_v44  ;;  %458 = vmatpush.msra.mxu1 %v277_v45  ;;  %v929_v2 = vld [vmem:[%s4267_s3 + $0x78] sm:$0xff]  ;;  %v976_v7 = vld [vmem:[%s4267_s3 + $0x1f0] sm:$0xff]  ;;  %v927_v10 = vld [vmem:[%s4267_s3 + $0x68] sm:$0xff] }
  0x23   : > { %571 = vmatpush.msra.mxu2 %v278_v46  ;;  %684 = vmatpush.msra.mxu3 %v279_v47  ;;  %v977_v3 = vld [vmem:[%s4267_s3 + $0x1f8] sm:$0xff]  ;;  %v944_v8 = vld [vmem:[%s4267_s3 + $0xf0] sm:$0xff]  ;;  %v975_v11 = vld [vmem:[%s4267_s3 + $0x1e8] sm:$0xff] }
  0x24   : > { %346 = vmatpush.msra.mxu0 %v272_v48  ;;  %459 = vmatpush.msra.mxu1 %v273_v49  ;;  %v945_v4 = vld [vmem:[%s4267_s3 + $0xf8] sm:$0xff]  ;;  %v943_v12 = vld [vmem:[%s4267_s3 + $0xe8] sm:$0xff]  ;;  %v230_v14 = vld [vmem:[%s2878_s28 + $0x10] sm:$0xff] }
  0x25   : > { %572 = vmatpush.msra.mxu2 %v274_v50  ;;  %685 = vmatpush.msra.mxu3 %v275_v51  ;;  %v229_v13 = vld [vmem:[%s2878_s28 + $0x8] sm:$0xff]  ;;  %v958_v15 = vld [vmem:[%s4267_s3 + $0x160] sm:$0xff]  ;;  %v231_v19 = vld [vmem:[%s2878_s28 + $0x18] sm:$0xff] }
  0x26   : > { %347 = vmatpush.msra.mxu0 %v268_v52  ;;  %460 = vmatpush.msra.mxu1 %v269_v53  ;;  %v926_v16 = vld [vmem:[%s4267_s3 + $0x60] sm:$0xff]  ;;  %v957_v21 = vld [vmem:[%s4267_s3 + $0x158] sm:$0xff]  ;;  %v233_v25 = vld [vmem:[%s2878_s28 + $0x28] sm:$0xff] }
  0x27   : > { %573 = vmatpush.msra.mxu2 %v270_v54  ;;  %686 = vmatpush.msra.mxu3 %v271_v55  ;;  %v974_v17 = vld [vmem:[%s4267_s3 + $0x1e0] sm:$0xff]  ;;  %v925_v22 = vld [vmem:[%s4267_s3 + $0x58] sm:$0xff]  ;;  %v234_v26 = vld [vmem:[%s2878_s28 + $0x30] sm:$0xff] }
  0x28   : > { %348 = vmatpush.msra.mxu0 %v264_v56  ;;  %461 = vmatpush.msra.mxu1 %v265_v57  ;;  %v942_v18 = vld [vmem:[%s4267_s3 + $0xe0] sm:$0xff]  ;;  %v973_v23 = vld [vmem:[%s4267_s3 + $0x1d8] sm:$0xff]  ;;  %v956_v27 = vld [vmem:[%s4267_s3 + $0x150] sm:$0xff] }
  0x29   : > { %574 = vmatpush.msra.mxu2 %v266_v58  ;;  %687 = vmatpush.msra.mxu3 %v267_v59  ;;  %v232_v20 = vld [vmem:[%s2878_s28 + $0x20] sm:$0xff]  ;;  %v941_v24 = vld [vmem:[%s4267_s3 + $0xd8] sm:$0xff]  ;;  %v924_v28 = vld [vmem:[%s4267_s3 + $0x50] sm:$0xff] }
  0x2a   : > { %349 = vmatpush.msra.mxu0 %v260_v60  ;;  %462 = vmatpush.msra.mxu1 %v261_v61  ;;  %v972_v29 = vld [vmem:[%s4267_s3 + $0x1d0] sm:$0xff]  ;;  %v235_v31 = vld [vmem:[%s2878_s28 + $0x38] sm:$0xff]  ;;  %v236_v32 = vld [vmem:[%s2878_s28 + $0x40] sm:$0xff] }
  0x2b   : > { %575 = vmatpush.msra.mxu2 %v262_v62  ;;  %688 = vmatpush.msra.mxu3 %v263_v63  ;;  %v940_v30 = vld [vmem:[%s4267_s3 + $0xd0] sm:$0xff]  ;;  %v955_v33 = vld [vmem:[%s4267_s3 + $0x148] sm:$0xff]  ;;  %v954_v39 = vld [vmem:[%s4267_s3 + $0x140] sm:$0xff] }
  0x2c   : > { %350 = vmatmul.f32.vlgmr.msra.gmra.mxu0 %v228_v0  ;;  %463 = vmatmul.f32.vlgmr.msra.gmra.mxu1 %v228_v0  ;;  %v923_v34 = vld [vmem:[%s4267_s3 + $0x48] sm:$0xff]  ;;  %v238_v38 = vld [vmem:[%s2878_s28 + $0x50] sm:$0xff]  ;;  %v922_v40 = vld [vmem:[%s4267_s3 + $0x40] sm:$0xff] }
  0x2d   : > { %576 = vmatmul.f32.vlgmr.msra.gmra.mxu2 %v228_v0  ;;  %689 = vmatmul.f32.vlgmr.msra.gmra.mxu3 %v228_v0  ;;  %v971_v35 = vld [vmem:[%s4267_s3 + $0x1c8] sm:$0xff]  ;;  %v970_v41 = vld [vmem:[%s4267_s3 + $0x1c0] sm:$0xff]  ;;  %v239_v43 = vld [vmem:[%s2878_s28 + $0x58] sm:$0xff] }
  0x2e   : > { %1208 = vmatpush.msrb.mxu2 %v961_v1  ;;  %982 = vmatpush.msrb.mxu0 %v929_v2  ;;  %v939_v36 = vld [vmem:[%s4267_s3 + $0xc8] sm:$0xff]  ;;  %v938_v42 = vld [vmem:[%s4267_s3 + $0xc0] sm:$0xff]  ;;  %v953_v45 = vld [vmem:[%s4267_s3 + $0x138] sm:$0xff] }
  0x2f   : > { %1321 = vmatpush.msrb.mxu3 %v977_v3  ;;  %1095 = vmatpush.msrb.mxu1 %v945_v4  ;;  %v237_v37 = vld [vmem:[%s2878_s28 + $0x48] sm:$0xff]  ;;  %v240_v44 = vld [vmem:[%s2878_s28 + $0x60] sm:$0xff]  ;;  %v921_v46 = vld [vmem:[%s4267_s3 + $0x38] sm:$0xff] }
  0x30   : > { %1209 = vmatpush.msrb.mxu2 %v960_v5  ;;  %983 = vmatpush.msrb.mxu0 %v928_v6  ;;  %v969_v47 = vld [vmem:[%s4267_s3 + $0x1b8] sm:$0xff]  ;;  %v241_v48 = vld [vmem:[%s2878_s28 + $0x68] sm:$0xff]  ;;  %v242_v50 = vld [vmem:[%s2878_s28 + $0x70] sm:$0xff] }
  0x31   : > { %1322 = vmatpush.msrb.mxu3 %v976_v7  ;;  %1096 = vmatpush.msrb.mxu1 %v944_v8  ;;  %v937_v49 = vld [vmem:[%s4267_s3 + $0xb8] sm:$0xff]  ;;  %v952_v51 = vld [vmem:[%s4267_s3 + $0x130] sm:$0xff]  ;;  %v244_v58 = vld [vmem:[%s2878_s28 + $0x80] sm:$0xff] }
  0x32   : > { %1210 = vmatpush.msrb.mxu2 %v959_v9  ;;  %984 = vmatpush.msrb.mxu0 %v927_v10  ;;  %v920_v52 = vld [vmem:[%s4267_s3 + $0x30] sm:$0xff]  ;;  %v243_v54 = vld [vmem:[%s2878_s28 + $0x78] sm:$0xff]  ;;  %v951_v59 = vld [vmem:[%s4267_s3 + $0x128] sm:$0xff] }
  0x33   : > { %1323 = vmatpush.msrb.mxu3 %v975_v11  ;;  %1097 = vmatpush.msrb.mxu1 %v943_v12  ;;  %v968_v53 = vld [vmem:[%s4267_s3 + $0x1b0] sm:$0xff]  ;;  %v919_v60 = vld [vmem:[%s4267_s3 + $0x28] sm:$0xff]  ;;  %v950_v9 = vld [vmem:[%s4267_s3 + $0x120] sm:$0xff] }
  0x34   : > { %353 = vmatmul.f32.gmra.mxu0 %v229_v13  ;;  %466 = vmatmul.f32.gmra.mxu1 %v229_v13  ;;  %v936_v55 = vld [vmem:[%s4267_s3 + $0xb0] sm:$0xff]  ;;  %v967_v61 = vld [vmem:[%s4267_s3 + $0x1a8] sm:$0xff]  ;;  %v918_v10 = vld [vmem:[%s4267_s3 + $0x20] sm:$0xff] }
  0x35   : > { %579 = vmatmul.f32.gmra.mxu2 %v229_v13  ;;  %692 = vmatmul.f32.gmra.mxu3 %v229_v13  ;;  %v245_v2 = vld [vmem:[%s2878_s28 + $0x88] sm:$0xff]  ;;  %v246_v8 = vld [vmem:[%s2878_s28 + $0x90] sm:$0xff]  ;;  %v966_v11 = vld [vmem:[%s4267_s3 + $0x1a0] sm:$0xff] }
  0x36   : > { %1211 = vmatpush.msrb.mxu2 %v958_v15  ;;  %985 = vmatpush.msrb.mxu0 %v926_v16  ;;  %v935_v3 = vld [vmem:[%s4267_s3 + $0xa8] sm:$0xff]  ;;  %v247_v16 = vld [vmem:[%s2878_s28 + $0x98] sm:$0xff] }
  0x37   : > { %1324 = vmatpush.msrb.mxu3 %v974_v17  ;;  %1098 = vmatpush.msrb.mxu1 %v942_v18  ;;  %v934_v17 = vld [vmem:[%s4267_s3 + $0xa0] sm:$0xff] }
  0x38   : > { %1212 = vmatpush.msrb.mxu2 %v957_v21  ;;  %986 = vmatpush.msrb.mxu0 %v925_v22  ;;  %v248_v22 = vld [vmem:[%s2878_s28 + $0xa0] sm:$0xff] }
  0x39   : > { %1325 = vmatpush.msrb.mxu3 %v973_v23  ;;  %1099 = vmatpush.msrb.mxu1 %v941_v24  ;;  %v949_v23 = vld [vmem:[%s4267_s3 + $0x118] sm:$0xff] }
  0x3a   : > { %1213 = vmatpush.msrb.mxu2 %v956_v27  ;;  %987 = vmatpush.msrb.mxu0 %v924_v28  ;;  %v917_v24 = vld [vmem:[%s4267_s3 + $0x18] sm:$0xff] }
  0x3b   : > { %1326 = vmatpush.msrb.mxu3 %v972_v29  ;;  %1100 = vmatpush.msrb.mxu1 %v940_v30  ;;  %v249_v30 = vld [vmem:[%s2878_s28 + $0xa8] sm:$0xff] }
  0x3c   : > { %356 = vmatmul.f32.gmra.mxu0 %v230_v14  ;;  %469 = vmatmul.f32.gmra.mxu1 %v230_v14 }
  0x3d   : > { %582 = vmatmul.f32.gmra.mxu2 %v230_v14  ;;  %695 = vmatmul.f32.gmra.mxu3 %v230_v14 }
  0x3e   : > { %1214 = vmatpush.msrb.mxu2 %v955_v33  ;;  %988 = vmatpush.msrb.mxu0 %v923_v34 }
  0x3f   : > { %1327 = vmatpush.msrb.mxu3 %v971_v35  ;;  %1101 = vmatpush.msrb.mxu1 %v939_v36  ;;  %v250_v36 = vld [vmem:[%s2878_s28 + $0xb0] sm:$0xff] }
  0x40   : > { %1215 = vmatpush.msrb.mxu2 %v954_v39  ;;  %989 = vmatpush.msrb.mxu0 %v922_v40  ;;  %v964_v39 = vld [vmem:[%s4267_s3 + $0x190] sm:$0xff] }
  0x41   : > { %1328 = vmatpush.msrb.mxu3 %v970_v41  ;;  %1102 = vmatpush.msrb.mxu1 %v938_v42 }
  0x42   : > { %1216 = vmatpush.msrb.mxu2 %v953_v45  ;;  %990 = vmatpush.msrb.mxu0 %v921_v46  ;;  %v932_v45 = vld [vmem:[%s4267_s3 + $0x90] sm:$0xff] }
  0x43   : > { %1329 = vmatpush.msrb.mxu3 %v969_v47  ;;  %1103 = vmatpush.msrb.mxu1 %v937_v49 }
  0x44   : > { %359 = vmatmul.f32.gmra.mxu0 %v231_v19  ;;  %472 = vmatmul.f32.gmra.mxu1 %v231_v19 }
  0x45   : > { %585 = vmatmul.f32.gmra.mxu2 %v231_v19  ;;  %698 = vmatmul.f32.gmra.mxu3 %v231_v19 }
  0x46   : > { %1217 = vmatpush.msrb.mxu2 %v952_v51  ;;  %991 = vmatpush.msrb.mxu0 %v920_v52  ;;  %v947_v51 = vld [vmem:[%s4267_s3 + $0x108] sm:$0xff] }
  0x47   : > { %1330 = vmatpush.msrb.mxu3 %v968_v53  ;;  %1104 = vmatpush.msrb.mxu1 %v936_v55  ;;  %v915_v52 = vld [vmem:[%s4267_s3 + $0x8] sm:$0xff] }
  0x48   : > { %1218 = vmatpush.msrb.mxu2 %v951_v59  ;;  %992 = vmatpush.msrb.mxu0 %v919_v60  ;;  %v963_v53 = vld [vmem:[%s4267_s3 + $0x188] sm:$0xff] }
  0x49   : > { %1331 = vmatpush.msrb.mxu3 %v967_v61  ;;  %1105 = vmatpush.msrb.mxu1 %v935_v3  ;;  %v253_v60 = vld [vmem:[%s2878_s28 + $0xc8] sm:$0xff] }
  0x4a   : > { %1219 = vmatpush.msrb.mxu2 %v950_v9  ;;  %993 = vmatpush.msrb.mxu0 %v918_v10  ;;  %v931_v61 = vld [vmem:[%s4267_s3 + $0x88] sm:$0xff]  ;;  %v254_v10 = vld [vmem:[%s2878_s28 + $0xd0] sm:$0xff] }
  0x4b   : > { %1332 = vmatpush.msrb.mxu3 %v966_v11  ;;  %1106 = vmatpush.msrb.mxu1 %v934_v17  ;;  %v946_v11 = vld [vmem:[%s4267_s3 + $0x100] sm:$0xff] }
  0x4c   : > { %362 = vmatmul.f32.gmra.mxu0 %v232_v20  ;;  %475 = vmatmul.f32.gmra.mxu1 %v232_v20  ;;  %v962_v17 = vld [vmem:[%s4267_s3 + $0x180] sm:$0xff] }
  0x4d   : > { %588 = vmatmul.f32.gmra.mxu2 %v232_v20  ;;  %701 = vmatmul.f32.gmra.mxu3 %v232_v20 }
  0x4e   : > { %1220 = vmatpush.msrb.mxu2 %v949_v23  ;;  %994 = vmatpush.msrb.mxu0 %v917_v24 }
  0x54   : > { %365 = vmatmul.f32.gmra.mxu0 %v233_v25  ;;  %478 = vmatmul.f32.gmra.mxu1 %v233_v25 }
  0x55   : > { %591 = vmatmul.f32.gmra.mxu2 %v233_v25  ;;  %704 = vmatmul.f32.gmra.mxu3 %v233_v25  ;;  %v965_v25 = vld [vmem:[%s4267_s3 + $0x198] sm:$0xff] }
  0x56   : > { %1333 = vmatpush.msrb.mxu3 %v965_v25 }
  0x58   : > { %1334 = vmatpush.msrb.mxu3 %v964_v39 }
  0x5a   : > { %1335 = vmatpush.msrb.mxu3 %v963_v53  ;;  %v257_v53 = vld [vmem:[%s2878_s28 + $0xe8] sm:$0xff] }
  0x5c   : > { %368 = vmatmul.f32.gmra.mxu0 %v234_v26  ;;  %481 = vmatmul.f32.gmra.mxu1 %v234_v26 }
  0x5d   : > { %594 = vmatmul.f32.gmra.mxu2 %v234_v26  ;;  %707 = vmatmul.f32.gmra.mxu3 %v234_v26 }
  0x5e   : > { %1336 = vmatpush.msrb.mxu3 %v962_v17  ;;  %v324_v17 = vld [vmem:[%s4266_s2] sm:$0xf] }
  0x64   : > { %371 = vmatmul.f32.gmra.mxu0 %v235_v31  ;;  %484 = vmatmul.f32.gmra.mxu1 %v235_v31 }
  0x65   : > { %597 = vmatmul.f32.gmra.mxu2 %v235_v31  ;;  %710 = vmatmul.f32.gmra.mxu3 %v235_v31  ;;  %v933_v31 = vld [vmem:[%s4267_s3 + $0x98] sm:$0xff] }
  0x66   : > { %1107 = vmatpush.msrb.mxu1 %v933_v31  ;;  %v930_v31 = vld [vmem:[%s4267_s3 + $0x80] sm:$0xff] }
  0x68   : > { %1108 = vmatpush.msrb.mxu1 %v932_v45 }
  0x6a   : > { %1109 = vmatpush.msrb.mxu1 %v931_v61 }
  0x6c   : > { %374 = vmatmul.f32.gmra.mxu0 %v236_v32  ;;  %487 = vmatmul.f32.gmra.mxu1 %v236_v32 }
  0x6d   : > { %600 = vmatmul.f32.gmra.mxu2 %v236_v32  ;;  %713 = vmatmul.f32.gmra.mxu3 %v236_v32 }
  0x6e   : > { %1110 = vmatpush.msrb.mxu1 %v930_v31 }
  0x74   : > { %377 = vmatmul.f32.gmra.mxu0 %v237_v37  ;;  %490 = vmatmul.f32.gmra.mxu1 %v237_v37 }
  0x75   : > { %603 = vmatmul.f32.gmra.mxu2 %v237_v37  ;;  %716 = vmatmul.f32.gmra.mxu3 %v237_v37  ;;  %v948_v37 = vld [vmem:[%s4267_s3 + $0x110] sm:$0xff] }
  0x76   : > { %1221 = vmatpush.msrb.mxu2 %v948_v37 }
  0x78   : > { %1222 = vmatpush.msrb.mxu2 %v947_v51 }
  0x7a   : > { %1223 = vmatpush.msrb.mxu2 %v946_v11 }
  0x7c   : > { %380 = vmatmul.f32.gmra.mxu0 %v238_v38  ;;  %493 = vmatmul.f32.gmra.mxu1 %v238_v38 }
  0x7d   : > { %606 = vmatmul.f32.gmra.mxu2 %v238_v38  ;;  %719 = vmatmul.f32.gmra.mxu3 %v238_v38  ;;  %v916_v38 = vld [vmem:[%s4267_s3 + $0x10] sm:$0xff] }
  0x7e   : > { %995 = vmatpush.msrb.mxu0 %v916_v38 }
  0x80   : > { %996 = vmatpush.msrb.mxu0 %v915_v52 }
  0x84   : > { %383 = vmatmul.f32.gmra.mxu0 %v239_v43  ;;  %496 = vmatmul.f32.gmra.mxu1 %v239_v43 }
  0x85   : > { %609 = vmatmul.f32.gmra.mxu2 %v239_v43  ;;  %722 = vmatmul.f32.gmra.mxu3 %v239_v43 }
  0x8c   : > { %386 = vmatmul.f32.gmra.mxu0 %v240_v44  ;;  %499 = vmatmul.f32.gmra.mxu1 %v240_v44 }
  0x8d   : > { %612 = vmatmul.f32.gmra.mxu2 %v240_v44  ;;  %725 = vmatmul.f32.gmra.mxu3 %v240_v44  ;;  %v251_v44 = vld [vmem:[%s2878_s28 + $0xb8] sm:$0xff] }
  0x94   : > { %389 = vmatmul.f32.gmra.mxu0 %v241_v48  ;;  %502 = vmatmul.f32.gmra.mxu1 %v241_v48 }
  0x95   : > { %615 = vmatmul.f32.gmra.mxu2 %v241_v48  ;;  %728 = vmatmul.f32.gmra.mxu3 %v241_v48 }
  0x9c   : > { %392 = vmatmul.f32.gmra.mxu0 %v242_v50  ;;  %505 = vmatmul.f32.gmra.mxu1 %v242_v50 }
  0x9d   : > { %618 = vmatmul.f32.gmra.mxu2 %v242_v50  ;;  %731 = vmatmul.f32.gmra.mxu3 %v242_v50  ;;  %v252_v50 = vld [vmem:[%s2878_s28 + $0xc0] sm:$0xff] }
  0xa4   : > { %395 = vmatmul.f32.gmra.mxu0 %v243_v54  ;;  %508 = vmatmul.f32.gmra.mxu1 %v243_v54 }
  0xa5   : > { %621 = vmatmul.f32.gmra.mxu2 %v243_v54  ;;  %734 = vmatmul.f32.gmra.mxu3 %v243_v54 }
  0xa9   : > { %v3028_v56 = vpop.f32.mrf.mxu0  ;;  %v3030_v57 = vpop.f32.mrf.mxu1 }
  0xac   : > { %398 = vmatmul.f32.gmra.mxu0 %v244_v58  ;;  %511 = vmatmul.f32.gmra.mxu1 %v244_v58 }
  0xad   : > { %624 = vmatmul.f32.gmra.mxu2 %v244_v58  ;;  %737 = vmatmul.f32.gmra.mxu3 %v244_v58 }
  0xb0   : > { %v3042_v62 = vpop.f32.mrf.mxu2  ;;  %v3044_v63 = vpop.f32.mrf.mxu3 }
  0xb1   : > { %v3046_v0 = vpop.f32.mrf.mxu0  ;;  %v3048_v1 = vpop.f32.mrf.mxu1 }
  0xb4   : > { %401 = vmatmul.f32.gmra.mxu0 %v245_v2  ;;  %514 = vmatmul.f32.gmra.mxu1 %v245_v2 }
  0xb5   : > { %627 = vmatmul.f32.gmra.mxu2 %v245_v2  ;;  %740 = vmatmul.f32.gmra.mxu3 %v245_v2 }
  0xb8   : > { %v3054_v4 = vpop.f32.mrf.mxu2  ;;  %v3056_v5 = vpop.f32.mrf.mxu3 }
  0xb9   : > { %v3058_v6 = vpop.f32.mrf.mxu0  ;;  %v3060_v7 = vpop.f32.mrf.mxu1 }
  0xbc   : > { %404 = vmatmul.f32.gmra.mxu0 %v246_v8  ;;  %517 = vmatmul.f32.gmra.mxu1 %v246_v8 }
  0xbd   : > { %630 = vmatmul.f32.gmra.mxu2 %v246_v8  ;;  %743 = vmatmul.f32.gmra.mxu3 %v246_v8 }
  0xc0   : > { %v3072_v12 = vpop.f32.mrf.mxu2  ;;  %v3074_v13 = vpop.f32.mrf.mxu3 }
  0xc1   : > { %v3076_v14 = vpop.f32.mrf.mxu0  ;;  %v3078_v15 = vpop.f32.mrf.mxu1 }
  0xc4   : > { %407 = vmatmul.f32.gmra.mxu0 %v247_v16  ;;  %520 = vmatmul.f32.gmra.mxu1 %v247_v16 }
  0xc5   : > { %633 = vmatmul.f32.gmra.mxu2 %v247_v16  ;;  %746 = vmatmul.f32.gmra.mxu3 %v247_v16  ;;  %v914_v16 = vld [vmem:[%s4267_s3] sm:$0xff] }
  0xc6   : > { %997 = vmatpush.msrb.mxu0 %v914_v16  ;;  %v258_v16 = vld [vmem:[%s2878_s28 + $0xf0] sm:$0xff] }
  0xc8   : > { %v3084_v18 = vpop.f32.mrf.mxu2  ;;  %v3086_v19 = vpop.f32.mrf.mxu3 }
  0xc9   : > { %v3088_v20 = vpop.f32.mrf.mxu0  ;;  %v3090_v21 = vpop.f32.mrf.mxu1 }
  0xcc   : > { %410 = vmatmul.f32.gmra.mxu0 %v248_v22  ;;  %523 = vmatmul.f32.gmra.mxu1 %v248_v22 }
  0xcd   : > { %636 = vmatmul.f32.gmra.mxu2 %v248_v22  ;;  %749 = vmatmul.f32.gmra.mxu3 %v248_v22 }
  0xd0   : > { %v3102_v26 = vpop.f32.mrf.mxu2  ;;  %v3104_v27 = vpop.f32.mrf.mxu3 }
  0xd1   : > { %v3106_v28 = vpop.f32.mrf.mxu0  ;;  %v3108_v29 = vpop.f32.mrf.mxu1 }
  0xd4   : > { %413 = vmatmul.f32.gmra.mxu0 %v249_v30  ;;  %526 = vmatmul.f32.gmra.mxu1 %v249_v30 }
  0xd5   : > { %639 = vmatmul.f32.gmra.mxu2 %v249_v30  ;;  %752 = vmatmul.f32.gmra.mxu3 %v249_v30  ;;  %v255_v30 = vld [vmem:[%s2878_s28 + $0xd8] sm:$0xff] }
  0xd8   : > { %v3114_v32 = vpop.f32.mrf.mxu2  ;;  %v3116_v33 = vpop.f32.mrf.mxu3 }
  0xd9   : > { %v3118_v34 = vpop.f32.mrf.mxu0  ;;  %v3120_v35 = vpop.f32.mrf.mxu1 }
  0xdc   : > { %416 = vmatmul.f32.gmra.mxu0 %v250_v36  ;;  %529 = vmatmul.f32.gmra.mxu1 %v250_v36 }
  0xdd   : > { %642 = vmatmul.f32.gmra.mxu2 %v250_v36  ;;  %755 = vmatmul.f32.gmra.mxu3 %v250_v36 }
  0xe0   : > { %v3132_v40 = vpop.f32.mrf.mxu2  ;;  %v3134_v41 = vpop.f32.mrf.mxu3 }
  0xe1   : > { %v3136_v42 = vpop.f32.mrf.mxu0  ;;  %v3138_v43 = vpop.f32.mrf.mxu1 }
  0xe4   : > { %419 = vmatmul.f32.gmra.mxu0 %v251_v44  ;;  %532 = vmatmul.f32.gmra.mxu1 %v251_v44 }
  0xe5   : > { %645 = vmatmul.f32.gmra.mxu2 %v251_v44  ;;  %758 = vmatmul.f32.gmra.mxu3 %v251_v44  ;;  %v256_v44 = vld [vmem:[%s2878_s28 + $0xe0] sm:$0xff] }
  0xe8   : > { %v3144_v46 = vpop.f32.mrf.mxu2  ;;  %v3146_v47 = vpop.f32.mrf.mxu3 }
  0xe9   : > { %v3148_v48 = vpop.f32.mrf.mxu0  ;;  %v3150_v49 = vpop.f32.mrf.mxu1 }
  0xec   : > { %422 = vmatmul.f32.gmra.mxu0 %v252_v50  ;;  %535 = vmatmul.f32.gmra.mxu1 %v252_v50 }
  0xed   : > { %648 = vmatmul.f32.gmra.mxu2 %v252_v50  ;;  %761 = vmatmul.f32.gmra.mxu3 %v252_v50 }
  0xf0   : > { %v3162_v54 = vpop.f32.mrf.mxu2  ;;  %v3164_v55 = vpop.f32.mrf.mxu3 }
  0xf1   : > { %v3166_v58 = vpop.f32.mrf.mxu0  ;;  %v3168_v59 = vpop.f32.mrf.mxu1 }
  0xf4   : > { %425 = vmatmul.f32.gmra.mxu0 %v253_v60  ;;  %538 = vmatmul.f32.gmra.mxu1 %v253_v60 }
  0xf5   : > { %651 = vmatmul.f32.gmra.mxu2 %v253_v60  ;;  %764 = vmatmul.f32.gmra.mxu3 %v253_v60 }
  0xf8   : > { %v3174_v2 = vpop.f32.mrf.mxu2  ;;  %v3176_v3 = vpop.f32.mrf.mxu3 }
  0xf9   : > { %v3178_v8 = vpop.f32.mrf.mxu0  ;;  %v3180_v9 = vpop.f32.mrf.mxu1 }
  0xfc   : > { %428 = vmatmul.f32.gmra.mxu0 %v254_v10  ;;  %541 = vmatmul.f32.gmra.mxu1 %v254_v10 }
  0xfd   : > { %654 = vmatmul.f32.gmra.mxu2 %v254_v10  ;;  %767 = vmatmul.f32.gmra.mxu3 %v254_v10 }
 0x100   : > { %v3192_v22 = vpop.f32.mrf.mxu2  ;;  %v3194_v23 = vpop.f32.mrf.mxu3 }
 0x101   : > { %v3196_v24 = vpop.f32.mrf.mxu0  ;;  %v3198_v25 = vpop.f32.mrf.mxu1 }
 0x104   : > { %431 = vmatmul.f32.gmra.mxu0 %v255_v30  ;;  %544 = vmatmul.f32.gmra.mxu1 %v255_v30 }
 0x105   : > { %657 = vmatmul.f32.gmra.mxu2 %v255_v30  ;;  %770 = vmatmul.f32.gmra.mxu3 %v255_v30 }
 0x108   : > { %v3204_v36 = vpop.f32.mrf.mxu2  ;;  %v3206_v37 = vpop.f32.mrf.mxu3 }
 0x109   : > { %v3208_v38 = vpop.f32.mrf.mxu0  ;;  %v3210_v39 = vpop.f32.mrf.mxu1 }
 0x10a   : > { %4270 = vst [vmem:[#allocation2_spill] sm:$0xff] %v3210_v39 }
 0x10c   : > { %434 = vmatmul.f32.gmra.mxu0 %v256_v44  ;;  %547 = vmatmul.f32.gmra.mxu1 %v256_v44 }
 0x10d   : > { %660 = vmatmul.f32.gmra.mxu2 %v256_v44  ;;  %773 = vmatmul.f32.gmra.mxu3 %v256_v44 }
 0x110   : > { %v3213_v45 = vpop.f32.mrf.mxu2  ;;  %v3215_v50 = vpop.f32.mrf.mxu3 }
 0x111   : > { %4271 = vst [vmem:[#allocation3_spill] sm:$0xff] %v3213_v45  ;;  %v3217_v51 = vpop.f32.mrf.mxu0  ;;  %v3219_v52 = vpop.f32.mrf.mxu1 }
 0x112   : > { %4272 = vst [vmem:[#allocation4_spill] sm:$0xff] %v3215_v50 }
 0x113   : > { %4273 = vst [vmem:[#allocation5_spill] sm:$0xff] %v3217_v51 }
 0x114   : > { %4274 = vst [vmem:[#allocation6_spill] sm:$0xff] %v3219_v52  ;;  %437 = vmatmul.f32.gmra.mxu0 %v257_v53  ;;  %550 = vmatmul.f32.gmra.mxu1 %v257_v53 }
 0x115   : > { %663 = vmatmul.f32.gmra.mxu2 %v257_v53  ;;  %776 = vmatmul.f32.gmra.mxu3 %v257_v53 }
 0x118   : > { %v3222_v60 = vpop.f32.mrf.mxu2  ;;  %v3224_v61 = vpop.f32.mrf.mxu3 }
 0x119   : > { %4275 = vst [vmem:[#allocation7_spill] sm:$0xff] %v3222_v60  ;;  %v3226_v10 = vpop.f32.mrf.mxu0  ;;  %v3228_v11 = vpop.f32.mrf.mxu1  ;;  %v3247_v60 = vperm.slane %v324_v17, 2 }
 0x11a   : > { %4276 = vst [vmem:[#allocation8_spill] sm:$0xff] %v3224_v61  ;;  %v3243_v61 = vperm.slane %v324_v17, 0 }
 0x11b   : > { %4277 = vst [vmem:[#allocation9_spill] sm:$0xff] %v3226_v10  ;;  %v259_v10 = vld [vmem:[%s2878_s28 + $0xf8] sm:$0xff] }
 0x11c   : > { %4278 = vst [vmem:[#allocation10_spill] sm:$0xff] %v3228_v11  ;;  %440 = vmatmul.f32.gmra.mxu0 %v258_v16  ;;  %553 = vmatmul.f32.gmra.mxu1 %v258_v16  ;;  %v3245_v11 = vperm.slane %v324_v17, 1 }
 0x11d   : > { %666 = vmatmul.f32.gmra.mxu2 %v258_v16  ;;  %779 = vmatmul.f32.gmra.mxu3 %v258_v16  ;;  %v3249_v16 = vperm.slane %v324_v17, 3 }
 0x120   : > { %v3234_v30 = vpop.f32.mrf.mxu2  ;;  %v3236_v31 = vpop.f32.mrf.mxu3 }
 0x121   : > { %4279 = vst [vmem:[#allocation11_spill] sm:$0xff] %v3234_v30  ;;  %v3238_v44 = vpop.f32.mrf.mxu0  ;;  %v3240_v53 = vpop.f32.mrf.mxu1  ;;  %v691_v30 = vadd.f32 %v3044_v63, %v3249_v16  ;;  %v581_v63 = vadd.f32 %v3054_v4, %v3247_v60  ;;  %v471_v4 = vadd.f32 %v3060_v7, %v3245_v11  ;;  %v361_v7 = vadd.f32 %v3076_v14, %v3243_v61 }
 0x122   : > { %4280 = vst [vmem:[#allocation12_spill] sm:$0xff] %v3236_v31  ;;  %v352_v31 = vadd.f32 %v3028_v56, %v3243_v61 }
 0x123   : > { %4281 = vst [vmem:[#allocation13_spill] sm:$0xff] %v3238_v44  ;;  %v465_v44 = vadd.f32 %v3030_v57, %v3245_v11  ;;  %v789_v39 = vmax.f32 %v691_v30, 0.0  ;;  %v355_v57 = vadd.f32 %v3046_v0, %v3243_v61  ;;  %v792_v0 = vmax.f32 %v581_v63, 0.0 }
 0x124   : > { %4282 = vst [vmem:[#allocation14_spill] sm:$0xff] %v3240_v53  ;;  %443 = vmatmul.f32.gmra.mxu0 %v259_v10  ;;  %556 = vmatmul.f32.gmra.mxu1 %v259_v10  ;;  %v578_v53 = vadd.f32 %v3042_v62, %v3247_v60  ;;  %v468_v62 = vadd.f32 %v3048_v1, %v3245_v11 }
 0x125   : > { %669 = vmatmul.f32.gmra.mxu2 %v259_v10  ;;  %782 = vmatmul.f32.gmra.mxu3 %v259_v10  ;;  %v786_v10 = vmax.f32 %v352_v31, 0.0  ;;  %v787_v45 = vmax.f32 %v465_v44, 0.0  ;;  %v358_v1 = vadd.f32 %v3058_v6, %v3243_v61 }
 0x126   : > { %v788_v56 = vmax.f32 %v578_v53, 0.0  ;;  %v791_v53 = vmax.f32 %v468_v62, 0.0 }
 0x128   : > { %v3259_v52 = vpop.f32.mrf.mxu2  ;;  %v3261_v17 = vpop.f32.mrf.mxu3 }
 0x129   : > { %v3263_v51 = vpop.f32.mrf.mxu0  ;;  %v3265_v50 = vpop.f32.mrf.mxu1 }
 0x12a   : > { %4283 = vst [vmem:[#allocation15_spill] sm:$0xff] %v3265_v50  ;;  %v694_v50 = vadd.f32 %v3056_v5, %v3249_v16  ;;  %v584_v5 = vadd.f32 %v3072_v12, %v3247_v60  ;;  %v474_v12 = vadd.f32 %v3078_v15, %v3245_v11  ;;  %v364_v15 = vadd.f32 %v3088_v20, %v3243_v61 }
 0x12c   : > { %998 = vmatmul.f32.vlgmr.msrb.gmra.mxu0 %v786_v10  ;;  %1111 = vmatmul.f32.vlgmr.msrb.gmra.mxu1 %v787_v45  ;;  %v793_v10 = vmax.f32 %v694_v50, 0.0  ;;  %v796_v6 = vmax.f32 %v584_v5, 0.0 }
 0x12d   : > { %1224 = vmatmul.f32.vlgmr.msrb.gmra.mxu2 %v788_v56  ;;  %1337 = vmatmul.f32.vlgmr.msrb.gmra.mxu3 %v789_v39  ;;  %v790_v39 = vmax.f32 %v355_v57, 0.0  ;;  %v697_v56 = vadd.f32 %v3074_v13, %v3249_v16  ;;  %v587_v13 = vadd.f32 %v3084_v18, %v3247_v60  ;;  %v477_v18 = vadd.f32 %v3090_v21, %v3245_v11 }
 0x12e   : > { %v367_v21 = vadd.f32 %v3106_v28, %v3243_v61 }
 0x12f   : > { %v800_v14 = vmax.f32 %v587_v13, 0.0 }
 0x130   : > { %v3275_v31 = vpop.f32.mrf.mxu2  ;;  %v3277_v44 = vpop.f32.mrf.mxu3 }
 0x131   : > { %v3279_v30 = vpop.f32.mrf.mxu0  ;;  %v3281_v45 = vpop.f32.mrf.mxu1 }
 0x134   : > { %1001 = vmatmul.f32.gmra.mxu0 %v790_v39  ;;  %1114 = vmatmul.f32.gmra.mxu1 %v791_v53  ;;  %v794_v39 = vmax.f32 %v358_v1, 0.0  ;;  %v795_v53 = vmax.f32 %v471_v4, 0.0 }
 0x135   : > { %1227 = vmatmul.f32.gmra.mxu2 %v792_v0  ;;  %1340 = vmatmul.f32.gmra.mxu3 %v793_v10  ;;  %v797_v0 = vmax.f32 %v697_v56, 0.0  ;;  %v700_v10 = vadd.f32 %v3086_v19, %v3249_v16  ;;  %v590_v19 = vadd.f32 %v3102_v26, %v3247_v60  ;;  %v480_v26 = vadd.f32 %v3108_v29, %v3245_v11 }
 0x136   : > { %v370_v29 = vadd.f32 %v3118_v34, %v3243_v61 }
 0x137   : > { %v804_v20 = vmax.f32 %v590_v19, 0.0 }
 0x138   : > { %v3291_v57 = vpop.f32.mrf.mxu2  ;;  %v3293_v62 = vpop.f32.mrf.mxu3 }
 0x139   : > { %v3295_v50 = vpop.f32.mrf.mxu0  ;;  %v3297_v63 = vpop.f32.mrf.mxu1 }
 0x13c   : > { %1004 = vmatmul.f32.gmra.mxu0 %v794_v39  ;;  %1117 = vmatmul.f32.gmra.mxu1 %v795_v53  ;;  %v798_v39 = vmax.f32 %v361_v7, 0.0  ;;  %v799_v53 = vmax.f32 %v474_v12, 0.0 }
 0x13d   : > { %1230 = vmatmul.f32.gmra.mxu2 %v796_v6  ;;  %1343 = vmatmul.f32.gmra.mxu3 %v797_v0  ;;  %v801_v6 = vmax.f32 %v700_v10, 0.0  ;;  %v703_v0 = vadd.f32 %v3104_v27, %v3249_v16  ;;  %v593_v27 = vadd.f32 %v3114_v32, %v3247_v60  ;;  %v483_v32 = vadd.f32 %v3120_v35, %v3245_v11 }
 0x13e   : > { %v373_v35 = vadd.f32 %v3136_v42, %v3243_v61 }
 0x13f   : > { %v808_v28 = vmax.f32 %v593_v27, 0.0 }
 0x140   : > { %v3307_v1 = vpop.f32.mrf.mxu2  ;;  %v3309_v4 = vpop.f32.mrf.mxu3 }
 0x141   : > { %v3311_v5 = vpop.f32.mrf.mxu0  ;;  %v3313_v56 = vpop.f32.mrf.mxu1 }
 0x144   : > { %1007 = vmatmul.f32.gmra.mxu0 %v798_v39  ;;  %1120 = vmatmul.f32.gmra.mxu1 %v799_v53  ;;  %v802_v39 = vmax.f32 %v364_v15, 0.0  ;;  %v803_v53 = vmax.f32 %v477_v18, 0.0 }
 0x145   : > { %1233 = vmatmul.f32.gmra.mxu2 %v800_v14  ;;  %1346 = vmatmul.f32.gmra.mxu3 %v801_v6  ;;  %v805_v14 = vmax.f32 %v703_v0, 0.0  ;;  %v706_v6 = vadd.f32 %v3116_v33, %v3249_v16  ;;  %v596_v33 = vadd.f32 %v3132_v40, %v3247_v60  ;;  %v486_v40 = vadd.f32 %v3138_v43, %v3245_v11 }
 0x146   : > { %v376_v43 = vadd.f32 %v3148_v48, %v3243_v61 }
 0x147   : > { %v812_v34 = vmax.f32 %v596_v33, 0.0 }
 0x148   : > { %v3323_v7 = vpop.f32.mrf.mxu2  ;;  %v3325_v12 = vpop.f32.mrf.mxu3 }
 0x149   : > { %v3327_v13 = vpop.f32.mrf.mxu0  ;;  %v3329_v10 = vpop.f32.mrf.mxu1 }
 0x14c   : > { %1010 = vmatmul.f32.gmra.mxu0 %v802_v39  ;;  %1123 = vmatmul.f32.gmra.mxu1 %v803_v53  ;;  %v806_v39 = vmax.f32 %v367_v21, 0.0  ;;  %v807_v53 = vmax.f32 %v480_v26, 0.0 }
 0x14d   : > { %1236 = vmatmul.f32.gmra.mxu2 %v804_v20  ;;  %1349 = vmatmul.f32.gmra.mxu3 %v805_v14  ;;  %v809_v20 = vmax.f32 %v706_v6, 0.0  ;;  %v709_v14 = vadd.f32 %v3134_v41, %v3249_v16  ;;  %v599_v41 = vadd.f32 %v3144_v46, %v3247_v60  ;;  %v489_v46 = vadd.f32 %v3150_v49, %v3245_v11 }
 0x14e   : > { %v379_v49 = vadd.f32 %v3166_v58, %v3243_v61 }
 0x14f   : > { %v816_v42 = vmax.f32 %v599_v41, 0.0 }
 0x150   : > { %v3339_v15 = vpop.f32.mrf.mxu2  ;;  %v3341_v18 = vpop.f32.mrf.mxu3 }
 0x151   : > { %v3343_v19 = vpop.f32.mrf.mxu0  ;;  %v3345_v0 = vpop.f32.mrf.mxu1 }
 0x154   : > { %1013 = vmatmul.f32.gmra.mxu0 %v806_v39  ;;  %1126 = vmatmul.f32.gmra.mxu1 %v807_v53  ;;  %v810_v39 = vmax.f32 %v370_v29, 0.0  ;;  %v811_v53 = vmax.f32 %v483_v32, 0.0 }
 0x155   : > { %1239 = vmatmul.f32.gmra.mxu2 %v808_v28  ;;  %1352 = vmatmul.f32.gmra.mxu3 %v809_v20  ;;  %v813_v28 = vmax.f32 %v709_v14, 0.0  ;;  %v712_v20 = vadd.f32 %v3146_v47, %v3249_v16  ;;  %v602_v47 = vadd.f32 %v3162_v54, %v3247_v60  ;;  %v492_v54 = vadd.f32 %v3168_v59, %v3245_v11 }
 0x156   : > { %v382_v59 = vadd.f32 %v3178_v8, %v3243_v61 }
 0x157   : > { %v820_v48 = vmax.f32 %v602_v47, 0.0 }
 0x158   : > { %v3355_v21 = vpop.f32.mrf.mxu2  ;;  %v3357_v26 = vpop.f32.mrf.mxu3 }
 0x159   : > { %v3359_v27 = vpop.f32.mrf.mxu0  ;;  %v3361_v6 = vpop.f32.mrf.mxu1 }
 0x15c   : > { %1016 = vmatmul.f32.gmra.mxu0 %v810_v39  ;;  %1129 = vmatmul.f32.gmra.mxu1 %v811_v53  ;;  %v814_v39 = vmax.f32 %v373_v35, 0.0  ;;  %v815_v53 = vmax.f32 %v486_v40, 0.0 }
 0x15d   : > { %1242 = vmatmul.f32.gmra.mxu2 %v812_v34  ;;  %1355 = vmatmul.f32.gmra.mxu3 %v813_v28  ;;  %v817_v34 = vmax.f32 %v712_v20, 0.0  ;;  %v715_v28 = vadd.f32 %v3164_v55, %v3249_v16  ;;  %v605_v55 = vadd.f32 %v3174_v2, %v3247_v60  ;;  %v495_v2 = vadd.f32 %v3180_v9, %v3245_v11 }
 0x15e   : > { %v385_v9 = vadd.f32 %v3196_v24, %v3243_v61 }
 0x15f   : > { %v824_v58 = vmax.f32 %v605_v55, 0.0 }
 0x160   : > { %v3371_v29 = vpop.f32.mrf.mxu2  ;;  %v3373_v32 = vpop.f32.mrf.mxu3 }
 0x161   : > { %v3375_v33 = vpop.f32.mrf.mxu0  ;;  %v3377_v14 = vpop.f32.mrf.mxu1 }
 0x164   : > { %1019 = vmatmul.f32.gmra.mxu0 %v814_v39  ;;  %1132 = vmatmul.f32.gmra.mxu1 %v815_v53  ;;  %v818_v39 = vmax.f32 %v376_v43, 0.0  ;;  %v819_v53 = vmax.f32 %v489_v46, 0.0 }
 0x165   : > { %1245 = vmatmul.f32.gmra.mxu2 %v816_v42  ;;  %1358 = vmatmul.f32.gmra.mxu3 %v817_v34  ;;  %v821_v42 = vmax.f32 %v715_v28, 0.0  ;;  %v718_v34 = vadd.f32 %v3176_v3, %v3249_v16  ;;  %v608_v3 = vadd.f32 %v3192_v22, %v3247_v60  ;;  %v498_v22 = vadd.f32 %v3198_v25, %v3245_v11 }
 0x166   : > { %v388_v25 = vadd.f32 %v3208_v38, %v3243_v61 }
 0x167   : > { %v828_v8 = vmax.f32 %v608_v3, 0.0 }
 0x168   : > { %v3387_v35 = vpop.f32.mrf.mxu2  ;;  %v3389_v40 = vpop.f32.mrf.mxu3 }
 0x169   : > { %v3391_v41 = vpop.f32.mrf.mxu0  ;;  %v3393_v20 = vpop.f32.mrf.mxu1 }
 0x16c   : > { %1022 = vmatmul.f32.gmra.mxu0 %v818_v39  ;;  %1135 = vmatmul.f32.gmra.mxu1 %v819_v53  ;;  %v822_v39 = vmax.f32 %v379_v49, 0.0  ;;  %v823_v53 = vmax.f32 %v492_v54, 0.0 }
 0x16d   : > { %1248 = vmatmul.f32.gmra.mxu2 %v820_v48  ;;  %1361 = vmatmul.f32.gmra.mxu3 %v821_v42  ;;  %v825_v48 = vmax.f32 %v718_v34, 0.0  ;;  %v721_v42 = vadd.f32 %v3194_v23, %v3249_v16  ;;  %v611_v23 = vadd.f32 %v3204_v36, %v3247_v60  ;;  %v4287_v36 = vld [vmem:[#allocation2_spill] sm:$0xff] }
 0x16f   : > { %v832_v24 = vmax.f32 %v611_v23, 0.0 }
 0x170   : > { %v3403_v43 = vpop.f32.mrf.mxu2  ;;  %v3405_v46 = vpop.f32.mrf.mxu3 }
 0x171   : > { %v3407_v47 = vpop.f32.mrf.mxu0  ;;  %v3409_v28 = vpop.f32.mrf.mxu1 }
 0x174   : > { %1025 = vmatmul.f32.gmra.mxu0 %v822_v39  ;;  %1138 = vmatmul.f32.gmra.mxu1 %v823_v53  ;;  %v826_v39 = vmax.f32 %v382_v59, 0.0  ;;  %v827_v53 = vmax.f32 %v495_v2, 0.0 }
 0x175   : > { %1251 = vmatmul.f32.gmra.mxu2 %v824_v58  ;;  %1364 = vmatmul.f32.gmra.mxu3 %v825_v48  ;;  %v829_v58 = vmax.f32 %v721_v42, 0.0  ;;  %v724_v48 = vadd.f32 %v3206_v37, %v3249_v16  ;;  %v501_v37 = vadd.f32 %v4287_v36, %v3245_v11 }
 0x178   : > { %v3419_v49 = vpop.f32.mrf.mxu2  ;;  %v3421_v54 = vpop.f32.mrf.mxu3 }
 0x179   : > { %v3423_v55 = vpop.f32.mrf.mxu0  ;;  %v3425_v34 = vpop.f32.mrf.mxu1 }
 0x17c   : > { %1028 = vmatmul.f32.gmra.mxu0 %v826_v39  ;;  %1141 = vmatmul.f32.gmra.mxu1 %v827_v53  ;;  %v830_v39 = vmax.f32 %v385_v9, 0.0  ;;  %v831_v53 = vmax.f32 %v498_v22, 0.0 }
 0x17d   : > { %1254 = vmatmul.f32.gmra.mxu2 %v828_v8  ;;  %1367 = vmatmul.f32.gmra.mxu3 %v829_v58  ;;  %v833_v8 = vmax.f32 %v724_v48, 0.0  ;;  %v4288_v58 = vld [vmem:[#allocation3_spill] sm:$0xff] }
 0x180   : > { %v3435_v59 = vpop.f32.mrf.mxu2  ;;  %v3437_v2 = vpop.f32.mrf.mxu3 }
 0x181   : > { %4284 = vst [vmem:[#allocation16_spill] sm:$0xff] %v3437_v2  ;;  %v3439_v3 = vpop.f32.mrf.mxu0  ;;  %v3441_v42 = vpop.f32.mrf.mxu1  ;;  %v614_v2 = vadd.f32 %v4288_v58, %v3247_v60 }
 0x182   : > { %4285 = vst [vmem:[#allocation17_spill] sm:$0xff] %v3439_v3  ;;  %v4289_v3 = vld [vmem:[#allocation4_spill] sm:$0xff] }
 0x183   : > { %4286 = vst [vmem:[#allocation18_spill] sm:$0xff] %v3441_v42  ;;  %v727_v42 = vadd.f32 %v4289_v3, %v3249_v16  ;;  %v836_v38 = vmax.f32 %v614_v2, 0.0  ;;  %v4295_v3 = vld [vmem:[#allocation6_spill] sm:$0xff] }
 0x184   : > { %1031 = vmatmul.f32.gmra.mxu0 %v830_v39  ;;  %1144 = vmatmul.f32.gmra.mxu1 %v831_v53  ;;  %v834_v39 = vmax.f32 %v388_v25, 0.0  ;;  %v835_v53 = vmax.f32 %v501_v37, 0.0  ;;  %v504_v58 = vadd.f32 %v4295_v3, %v3245_v11 }
 0x185   : > { %1257 = vmatmul.f32.gmra.mxu2 %v832_v24  ;;  %1370 = vmatmul.f32.gmra.mxu3 %v833_v8  ;;  %v837_v24 = vmax.f32 %v727_v42, 0.0  ;;  %v4294_v8 = vld [vmem:[#allocation5_spill] sm:$0xff] }
 0x186   : > { %v391_v36 = vadd.f32 %v4294_v8, %v3243_v61 }
 0x188   : > { %v3451_v9 = vpop.f32.mrf.mxu2  ;;  %v3453_v22 = vpop.f32.mrf.mxu3 }
 0x189   : > { %4290 = vst [vmem:[#allocation2_spill] sm:$0xff] %v3451_v9  ;;  %v3455_v23 = vpop.f32.mrf.mxu0  ;;  %v3457_v48 = vpop.f32.mrf.mxu1 }
 0x18a   : > { %4291 = vst [vmem:[#allocation3_spill] sm:$0xff] %v3453_v22  ;;  %v4296_v22 = vld [vmem:[#allocation7_spill] sm:$0xff] }
 0x18b   : > { %4292 = vst [vmem:[#allocation4_spill] sm:$0xff] %v3455_v23  ;;  %v617_v9 = vadd.f32 %v4296_v22, %v3247_v60  ;;  %v4297_v23 = vld [vmem:[#allocation8_spill] sm:$0xff]  ;;  %v4302_v22 = vld [vmem:[#allocation9_spill] sm:$0xff] }
 0x18c   : > { %4293 = vst [vmem:[#allocation19_spill] sm:$0xff] %v3457_v48  ;;  %1034 = vmatmul.f32.gmra.mxu0 %v834_v39  ;;  %1147 = vmatmul.f32.gmra.mxu1 %v835_v53  ;;  %v730_v48 = vadd.f32 %v4297_v23, %v3249_v16  ;;  %v838_v39 = vmax.f32 %v391_v36, 0.0  ;;  %v839_v53 = vmax.f32 %v504_v58, 0.0  ;;  %v394_v8 = vadd.f32 %v4302_v22, %v3243_v61  ;;  %v4303_v23 = vld [vmem:[#allocation10_spill] sm:$0xff] }
 0x18d   : > { %1260 = vmatmul.f32.gmra.mxu2 %v836_v38  ;;  %1373 = vmatmul.f32.gmra.mxu3 %v837_v24  ;;  %v840_v38 = vmax.f32 %v617_v9, 0.0  ;;  %v507_v3 = vadd.f32 %v4303_v23, %v3245_v11 }
 0x18e   : > { %v841_v24 = vmax.f32 %v730_v48, 0.0 }
 0x190   : > { %v3467_v25 = vpop.f32.mrf.mxu2  ;;  %v3469_v2 = vpop.f32.mrf.mxu3 }
 0x191   : > { %4298 = vst [vmem:[#allocation5_spill] sm:$0xff] %v3467_v25  ;;  %v3471_v42 = vpop.f32.mrf.mxu0  ;;  %v3473_v37 = vpop.f32.mrf.mxu1 }
 0x192   : > { %4299 = vst [vmem:[#allocation6_spill] sm:$0xff] %v3469_v2  ;;  %v4304_v2 = vld [vmem:[#allocation11_spill] sm:$0xff] }
 0x193   : > { %4300 = vst [vmem:[#allocation7_spill] sm:$0xff] %v3471_v42  ;;  %v620_v25 = vadd.f32 %v4304_v2, %v3247_v60  ;;  %v4305_v42 = vld [vmem:[#allocation12_spill] sm:$0xff]  ;;  %v4308_v2 = vld [vmem:[#allocation13_spill] sm:$0xff] }
 0x194   : > { %4301 = vst [vmem:[#allocation8_spill] sm:$0xff] %v3473_v37  ;;  %1037 = vmatmul.f32.gmra.mxu0 %v838_v39  ;;  %1150 = vmatmul.f32.gmra.mxu1 %v839_v53  ;;  %v733_v37 = vadd.f32 %v4305_v42, %v3249_v16  ;;  %v842_v39 = vmax.f32 %v394_v8, 0.0  ;;  %v843_v53 = vmax.f32 %v507_v3, 0.0  ;;  %v397_v22 = vadd.f32 %v4308_v2, %v3243_v61  ;;  %v4309_v42 = vld [vmem:[#allocation14_spill] sm:$0xff] }
 0x195   : > { %1263 = vmatmul.f32.gmra.mxu2 %v840_v38  ;;  %1376 = vmatmul.f32.gmra.mxu3 %v841_v24  ;;  %v844_v38 = vmax.f32 %v620_v25, 0.0  ;;  %v510_v23 = vadd.f32 %v4309_v42, %v3245_v11  ;;  %v626_v42 = vadd.f32 %v3275_v31, %v3247_v60 }
 0x196   : > { %v845_v24 = vmax.f32 %v733_v37, 0.0 }
 0x198   : > { %v3483_v36 = vpop.f32.mrf.mxu2  ;;  %v3485_v9 = vpop.f32.mrf.mxu3 }
 0x199   : > { %4306 = vst [vmem:[#allocation9_spill] sm:$0xff] %v3485_v9  ;;  %v3487_v48 = vpop.f32.mrf.mxu0  ;;  %v3489_v58 = vpop.f32.mrf.mxu1  ;;  %v623_v9 = vadd.f32 %v3259_v52, %v3247_v60  ;;  %v400_v52 = vadd.f32 %v3263_v51, %v3243_v61 }
 0x19a   : > { %4307 = vst [vmem:[#allocation10_spill] sm:$0xff] %v3489_v58  ;;  %v736_v58 = vadd.f32 %v3261_v17, %v3249_v16  ;;  %v4311_v17 = vld [vmem:[#allocation15_spill] sm:$0xff] }
 0x19b   : > { %v513_v2 = vadd.f32 %v4311_v17, %v3245_v11  ;;  %v516_v17 = vadd.f32 %v3281_v45, %v3245_v11 }
 0x19c   : > { %1040 = vmatmul.f32.gmra.mxu0 %v842_v39  ;;  %1153 = vmatmul.f32.gmra.mxu1 %v843_v53  ;;  %v846_v39 = vmax.f32 %v397_v22, 0.0  ;;  %v847_v53 = vmax.f32 %v510_v23, 0.0 }
 0x19d   : > { %1266 = vmatmul.f32.gmra.mxu2 %v844_v38  ;;  %1379 = vmatmul.f32.gmra.mxu3 %v845_v24  ;;  %v848_v38 = vmax.f32 %v623_v9, 0.0  ;;  %v849_v24 = vmax.f32 %v736_v58, 0.0  ;;  %v3518_v9 = vld [vmem:[%s4268_s4] ss:$0 sm:$0xff]  ;;  %v855_v45 = vmax.f32 %v516_v17, 0.0 }
 0x1a0   : > { %v3499_v8 = vpop.f32.mrf.mxu2  ;;  %v3501_v25 = vpop.f32.mrf.mxu3 }
 0x1a1   : > { %v3503_v37 = vpop.f32.mrf.mxu0  ;;  %v3505_v3 = vpop.f32.mrf.mxu1 }
 0x1a2   : > { %4310 = vst [vmem:[#allocation11_spill] sm:$0xff] %v3505_v3  ;;  %v739_v3 = vadd.f32 %v3277_v44, %v3249_v16  ;;  %v403_v44 = vadd.f32 %v3279_v30, %v3243_v61 }
 0x1a4   : > { %1043 = vmatmul.f32.gmra.mxu0 %v846_v39  ;;  %1156 = vmatmul.f32.gmra.mxu1 %v847_v53  ;;  %v850_v39 = vmax.f32 %v400_v52, 0.0  ;;  %v851_v53 = vmax.f32 %v513_v2, 0.0  ;;  %v742_v52 = vadd.f32 %v3293_v62, %v3249_v16  ;;  %v854_v30 = vmax.f32 %v403_v44, 0.0 }
 0x1a5   : > { %1269 = vmatmul.f32.gmra.mxu2 %v848_v38  ;;  %1382 = vmatmul.f32.gmra.mxu3 %v849_v24  ;;  %v852_v38 = vmax.f32 %v626_v42, 0.0  ;;  %v853_v24 = vmax.f32 %v739_v3, 0.0  ;;  %v745_v44 = vadd.f32 %v3309_v4, %v3249_v16  ;;  %v522_v4 = vadd.f32 %v3313_v56, %v3245_v11 }
 0x1a8   : > { %v3520_v58 = vpop.f32.mrf.mxu2  ;;  %v3522_v22 = vpop.f32.mrf.mxu3 }
 0x1a9   : > { %4312 = vst [vmem:[#allocation12_spill] sm:$0xff] %v3522_v22  ;;  %v999_v23 = vpop.f32.mrf.mxu0  ;;  %v1112_v51 = vpop.f32.mrf.mxu1  ;;  %v629_v22 = vadd.f32 %v3291_v57, %v3247_v60  ;;  %v857_v57 = vmax.f32 %v742_v52, 0.0 }
 0x1aa   : > { %v1000_v31 = vadd.f32 %v3518_v9, %v999_v23 }
 0x1ac   : > { %1046 = vmatmul.f32.gmra.mxu0 %v850_v39  ;;  %1159 = vmatmul.f32.gmra.mxu1 %v851_v53  ;;  %v1113_v3 = vadd.f32 %v1112_v51, %v1000_v31  ;;  %v406_v51 = vadd.f32 %v3295_v50, %v3243_v61  ;;  %v519_v31 = vadd.f32 %v3297_v63, %v3245_v11 }
 0x1ad   : > { %1272 = vmatmul.f32.gmra.mxu2 %v852_v38  ;;  %1385 = vmatmul.f32.gmra.mxu3 %v853_v24  ;;  %v856_v38 = vmax.f32 %v629_v22, 0.0  ;;  %v632_v22 = vadd.f32 %v3307_v1, %v3247_v60  ;;  %v409_v1 = vadd.f32 %v3311_v5, %v3243_v61 }
 0x1af   : > { %v860_v63 = vmax.f32 %v632_v22, 0.0  ;;  %v862_v5 = vmax.f32 %v409_v1, 0.0 }
 0x1b0   : > { %v1225_v2 = vpop.f32.mrf.mxu2  ;;  %v1338_v42 = vpop.f32.mrf.mxu3 }
 0x1b1   : > { %v1226_v23 = vadd.f32 %v1225_v2, %v1113_v3  ;;  %v1002_v39 = vpop.f32.mrf.mxu0  ;;  %v1115_v53 = vpop.f32.mrf.mxu1 }
 0x1b2   : > { %v1003_v62 = vadd.f32 %v3518_v9, %v1002_v39  ;;  %v859_v39 = vmax.f32 %v519_v31, 0.0 }
 0x1b3   : > { %v3540_v24 = vadd.f32 %v1338_v42, %v1226_v23  ;;  %v858_v23 = vmax.f32 %v406_v51, 0.0 }
 0x1b4   : > { %1049 = vmatmul.f32.gmra.mxu0 %v854_v30  ;;  %1162 = vmatmul.f32.gmra.mxu1 %v855_v45  ;;  %v1116_v17 = vadd.f32 %v1115_v53, %v1003_v62  ;;  %v861_v30 = vmax.f32 %v745_v44, 0.0  ;;  %v635_v53 = vadd.f32 %v3323_v7, %v3247_v60  ;;  %v412_v7 = vadd.f32 %v3327_v13, %v3243_v61 }
 0x1b5   : > { %2138 = vst [vmem:[%s3538_s19] sm:$0xff] %v3540_v24  ;;  %1275 = vmatmul.f32.gmra.mxu2 %v856_v38  ;;  %1388 = vmatmul.f32.gmra.mxu3 %v857_v57  ;;  %v748_v57 = vadd.f32 %v3325_v12, %v3249_v16  ;;  %v525_v12 = vadd.f32 %v3329_v10, %v3245_v11 }
 0x1b6   : > { %1466 = vrot.lane.b32.xlu0 %v3540_v24, %s2642_s13  ;;  %v866_v13 = vmax.f32 %v412_v7, 0.0 }
 0x1b7   : > { %v865_v56 = vmax.f32 %v748_v57, 0.0 }
 0x1b8   : > { %v1228_v52 = vpop.f32.mrf.mxu2  ;;  %v1341_v3 = vpop.f32.mrf.mxu3 }
 0x1b9   : > { %v1229_v2 = vadd.f32 %v1228_v52, %v1116_v17  ;;  %v1005_v42 = vpop.f32.mrf.mxu0  ;;  %v1118_v50 = vpop.f32.mrf.mxu1  ;;  %v863_v52 = vmax.f32 %v522_v4, 0.0 }
 0x1ba   : > { %v1006_v38 = vadd.f32 %v3518_v9, %v1005_v42 }
 0x1bb   : > { %v3555_v45 = vadd.f32 %v1341_v3, %v1229_v2  ;;  %v864_v3 = vmax.f32 %v635_v53, 0.0  ;;  %v867_v53 = vmax.f32 %v525_v12, 0.0 }
 0x1bc   : > { %1052 = vmatmul.f32.gmra.mxu0 %v858_v23  ;;  %1165 = vmatmul.f32.gmra.mxu1 %v859_v39  ;;  %v1119_v62 = vadd.f32 %v1118_v50, %v1006_v38  ;;  %v638_v50 = vadd.f32 %v3339_v15, %v3247_v60  ;;  %v751_v23 = vadd.f32 %v3341_v18, %v3249_v16 }
 0x1bd   : > { %2139 = vst [vmem:[%s3538_s19 + $0x8] sm:$0xff] %v3555_v45  ;;  %1278 = vmatmul.f32.gmra.mxu2 %v860_v63  ;;  %1391 = vmatmul.f32.gmra.mxu3 %v861_v30  ;;  %v415_v15 = vadd.f32 %v3343_v19, %v3243_v61  ;;  %v528_v18 = vadd.f32 %v3345_v0, %v3245_v11 }
 0x1be   : > { %1468 = vrot.lane.b32.xlu0 %v3555_v45, %s2642_s13  ;;  %v868_v57 = vmax.f32 %v638_v50, 0.0  ;;  %v869_v10 = vmax.f32 %v751_v23, 0.0  ;;  %v644_v23 = vadd.f32 %v3371_v29, %v3247_v60  ;;  %v421_v29 = vadd.f32 %v3375_v33, %v3243_v61 }
 0x1bf   : > { %v870_v19 = vmax.f32 %v415_v15, 0.0  ;;  %v647_v15 = vadd.f32 %v3387_v35, %v3247_v60  ;;  %v424_v35 = vadd.f32 %v3391_v41, %v3243_v61 }
 0x1c0   : > { %v1231_v51 = vpop.f32.mrf.mxu2  ;;  %v1344_v31 = vpop.f32.mrf.mxu3  ;;  %v878_v33 = vmax.f32 %v421_v29, 0.0 }
 0x1c1   : > { %v1232_v22 = vadd.f32 %v1231_v51, %v1119_v62  ;;  %v1008_v44 = vpop.f32.mrf.mxu0  ;;  %v1121_v17 = vpop.f32.mrf.mxu1  ;;  %v882_v41 = vmax.f32 %v424_v35, 0.0 }
 0x1c2   : > { %v1009_v42 = vadd.f32 %v3518_v9, %v1008_v44 }
 0x1c3   : > { %v3570_v2 = vadd.f32 %v1344_v31, %v1232_v22  ;;  %v641_v31 = vadd.f32 %v3355_v21, %v3247_v60  ;;  %v754_v22 = vadd.f32 %v3357_v26, %v3249_v16  ;;  %v418_v21 = vadd.f32 %v3359_v27, %v3243_v61 }
 0x1c4   : > { %1055 = vmatmul.f32.gmra.mxu0 %v862_v5  ;;  %1168 = vmatmul.f32.gmra.mxu1 %v863_v52  ;;  %v1122_v39 = vadd.f32 %v1121_v17, %v1009_v42  ;;  %v871_v42 = vmax.f32 %v528_v18, 0.0  ;;  %v531_v26 = vadd.f32 %v3361_v6, %v3245_v11  ;;  %v760_v18 = vadd.f32 %v3389_v40, %v3249_v16 }
 0x1c5   : > { %2140 = vst [vmem:[%s3538_s19 + $0x10] sm:$0xff] %v3570_v2  ;;  %1281 = vmatmul.f32.gmra.mxu2 %v864_v3  ;;  %1394 = vmatmul.f32.gmra.mxu3 %v865_v56  ;;  %v872_v7 = vmax.f32 %v641_v31, 0.0  ;;  %v873_v0 = vmax.f32 %v754_v22, 0.0  ;;  %v874_v27 = vmax.f32 %v418_v21, 0.0  ;;  %v537_v40 = vadd.f32 %v3393_v20, %v3245_v11 }
 0x1c6   : > { %1470 = vrot.lane.b32.xlu1 %v3570_v2, %s2642_s13 }
 0x1c8   : > { %v1234_v63 = vpop.f32.mrf.mxu2  ;;  %v1347_v30 = vpop.f32.mrf.mxu3 }
 0x1c9   : > { %v1235_v38 = vadd.f32 %v1234_v63, %v1122_v39  ;;  %v1011_v1 = vpop.f32.mrf.mxu0  ;;  %v1124_v4 = vpop.f32.mrf.mxu1  ;;  %v757_v39 = vadd.f32 %v3373_v32, %v3249_v16  ;;  %v534_v32 = vadd.f32 %v3377_v14, %v3245_v11  ;;  %v881_v14 = vmax.f32 %v760_v18, 0.0 }
 0x1ca   : > { %v1012_v51 = vadd.f32 %v3518_v9, %v1011_v1 }
 0x1cb   : > { %v3585_v62 = vadd.f32 %v1347_v30, %v1235_v38  ;;  %v877_v6 = vmax.f32 %v757_v39, 0.0 }
 0x1cc   : > { %1058 = vmatmul.f32.gmra.mxu0 %v866_v13  ;;  %1171 = vmatmul.f32.gmra.mxu1 %v867_v53  ;;  %v1125_v44 = vadd.f32 %v1124_v4, %v1012_v51  ;;  %v875_v53 = vmax.f32 %v531_v26, 0.0 }
 0x1cd   : > { %2141 = vst [vmem:[%s3538_s19 + $0x18] sm:$0xff] %v3585_v62  ;;  %1284 = vmatmul.f32.gmra.mxu2 %v868_v57  ;;  %1397 = vmatmul.f32.gmra.mxu3 %v869_v10  ;;  %v876_v57 = vmax.f32 %v644_v23, 0.0 }
 0x1ce   : > { %1472 = vrot.lane.b32.xlu1 %v3585_v62, %s2642_s13 }
 0x1d0   : > { %v1237_v17 = vpop.f32.mrf.mxu2  ;;  %v1350_v5 = vpop.f32.mrf.mxu3 }
 0x1d1   : > { %v1238_v52 = vadd.f32 %v1237_v17, %v1125_v44  ;;  %v1014_v3 = vpop.f32.mrf.mxu0  ;;  %v1127_v56 = vpop.f32.mrf.mxu1 }
 0x1d2   : > { %v1015_v50 = vadd.f32 %v3518_v9, %v1014_v3  ;;  %v879_v3 = vmax.f32 %v534_v32, 0.0 }
 0x1d3   : > { %v3600_v12 = vadd.f32 %v1350_v5, %v1238_v52 }
 0x1d4   : > { %1061 = vmatmul.f32.gmra.mxu0 %v870_v19  ;;  %1174 = vmatmul.f32.gmra.mxu1 %v871_v42  ;;  %v1128_v63 = vadd.f32 %v1127_v56, %v1015_v50  ;;  %v880_v56 = vmax.f32 %v647_v15, 0.0 }
 0x1d5   : > { %2142 = vst [vmem:[%s3538_s19 + $0x20] sm:$0xff] %v3600_v12  ;;  %1287 = vmatmul.f32.gmra.mxu2 %v872_v7  ;;  %1400 = vmatmul.f32.gmra.mxu3 %v873_v0  ;;  %v650_v7 = vadd.f32 %v3403_v43, %v3247_v60  ;;  %v763_v0 = vadd.f32 %v3405_v46, %v3249_v16 }
 0x1d6   : > { %1474 = vrot.lane.b32.xlu2 %v3600_v12, %s2642_s13  ;;  %v427_v43 = vadd.f32 %v3407_v47, %v3243_v61  ;;  %v540_v46 = vadd.f32 %v3409_v28, %v3245_v11 }
 0x1d7   : > { %v885_v20 = vmax.f32 %v763_v0, 0.0 }
 0x1d8   : > { %v1240_v30 = vpop.f32.mrf.mxu2  ;;  %v1353_v38 = vpop.f32.mrf.mxu3  ;;  %v886_v47 = vmax.f32 %v427_v43, 0.0  ;;  %v887_v15 = vmax.f32 %v540_v46, 0.0 }
 0x1d9   : > { %v1241_v1 = vadd.f32 %v1240_v30, %v1128_v63  ;;  %v1017_v4 = vpop.f32.mrf.mxu0  ;;  %v1130_v13 = vpop.f32.mrf.mxu1  ;;  %v883_v30 = vmax.f32 %v537_v40, 0.0 }
 0x1da   : > { %v1018_v51 = vadd.f32 %v3518_v9, %v1017_v4 }
 0x1db   : > { %v3615_v10 = vadd.f32 %v1353_v38, %v1241_v1  ;;  %v884_v38 = vmax.f32 %v650_v7, 0.0 }
 0x1dc   : > { %1064 = vmatmul.f32.gmra.mxu0 %v874_v27  ;;  %1177 = vmatmul.f32.gmra.mxu1 %v875_v53  ;;  %v1131_v31 = vadd.f32 %v1130_v13, %v1018_v51  ;;  %v653_v13 = vadd.f32 %v3419_v49, %v3247_v60  ;;  %v766_v27 = vadd.f32 %v3421_v54, %v3249_v16 }
 0x1dd   : > { %2143 = vst [vmem:[%s3538_s19 + $0x28] sm:$0xff] %v3615_v10  ;;  %1290 = vmatmul.f32.gmra.mxu2 %v876_v57  ;;  %1403 = vmatmul.f32.gmra.mxu3 %v877_v6  ;;  %v430_v49 = vadd.f32 %v3423_v55, %v3243_v61  ;;  %v543_v54 = vadd.f32 %v3425_v34, %v3245_v11 }
 0x1de   : > { %1476 = vrot.lane.b32.xlu2 %v3615_v10, %s2642_s13  ;;  %v888_v18 = vmax.f32 %v653_v13, 0.0  ;;  %v889_v28 = vmax.f32 %v766_v27, 0.0 }
 0x1df   : > { %v890_v55 = vmax.f32 %v430_v49, 0.0  ;;  %v891_v35 = vmax.f32 %v543_v54, 0.0 }
 0x1e0   : > { %v1243_v22 = vpop.f32.mrf.mxu2  ;;  %v1356_v44 = vpop.f32.mrf.mxu3 }
 0x1e1   : > { %v1244_v17 = vadd.f32 %v1243_v22, %v1131_v31  ;;  %v1020_v5 = vpop.f32.mrf.mxu0  ;;  %v1133_v52 = vpop.f32.mrf.mxu1 }
 0x1e2   : > { %v1021_v42 = vadd.f32 %v3518_v9, %v1020_v5 }
 0x1e3   : > { %v3630_v19 = vadd.f32 %v1356_v44, %v1244_v17  ;;  %v656_v44 = vadd.f32 %v3435_v59, %v3247_v60  ;;  %v4313_v17 = vld [vmem:[#allocation16_spill] sm:$0xff]  ;;  %v4314_v59 = vld [vmem:[#allocation17_spill] sm:$0xff] }
 0x1e4   : > { %1067 = vmatmul.f32.gmra.mxu0 %v878_v33  ;;  %1180 = vmatmul.f32.gmra.mxu1 %v879_v3  ;;  %v1134_v50 = vadd.f32 %v1133_v52, %v1021_v42  ;;  %v769_v5 = vadd.f32 %v4313_v17, %v3249_v16 }
 0x1e5   : > { %2144 = vst [vmem:[%s3538_s19 + $0x30] sm:$0xff] %v3630_v19  ;;  %1293 = vmatmul.f32.gmra.mxu2 %v880_v56  ;;  %1406 = vmatmul.f32.gmra.mxu3 %v881_v14  ;;  %v892_v40 = vmax.f32 %v656_v44, 0.0 }
 0x1e6   : > { %1478 = vrot.lane.b32.xlu0 %v3630_v19, %s2642_s13  ;;  %v893_v34 = vmax.f32 %v769_v5, 0.0 }
 0x1e8   : > { %v1246_v21 = vpop.f32.mrf.mxu2  ;;  %v1359_v26 = vpop.f32.mrf.mxu3 }
 0x1e9   : > { %v1247_v23 = vadd.f32 %v1246_v21, %v1134_v50  ;;  %v1023_v39 = vpop.f32.mrf.mxu0  ;;  %v1136_v63 = vpop.f32.mrf.mxu1  ;;  %v433_v50 = vadd.f32 %v4314_v59, %v3243_v61  ;;  %v4315_v21 = vld [vmem:[#allocation18_spill] sm:$0xff] }
 0x1ea   : > { %v1024_v4 = vadd.f32 %v3518_v9, %v1023_v39 }
 0x1eb   : > { %v3645_v1 = vadd.f32 %v1359_v26, %v1247_v23  ;;  %v546_v26 = vadd.f32 %v4315_v21, %v3245_v11  ;;  %v4316_v23 = vld [vmem:[#allocation2_spill] sm:$0xff]  ;;  %v894_v13 = vmax.f32 %v433_v50, 0.0  ;;  %v665_v50 = vadd.f32 %v3483_v36, %v3247_v60  ;;  %v4324_v21 = vld [vmem:[#allocation9_spill] sm:$0xff] }
 0x1ec   : > { %1070 = vmatmul.f32.gmra.mxu0 %v882_v41  ;;  %1183 = vmatmul.f32.gmra.mxu1 %v883_v30  ;;  %v1137_v53 = vadd.f32 %v1136_v63, %v1024_v4  ;;  %v659_v39 = vadd.f32 %v4316_v23, %v3247_v60  ;;  %v4317_v63 = vld [vmem:[#allocation3_spill] sm:$0xff]  ;;  %v442_v36 = vadd.f32 %v3487_v48, %v3243_v61 }
 0x1ed   : > { %2145 = vst [vmem:[%s3538_s19 + $0x38] sm:$0xff] %v3645_v1  ;;  %1296 = vmatmul.f32.gmra.mxu2 %v884_v38  ;;  %1409 = vmatmul.f32.gmra.mxu3 %v885_v20  ;;  %v772_v41 = vadd.f32 %v4317_v63, %v3249_v16  ;;  %v895_v27 = vmax.f32 %v546_v26, 0.0  ;;  %v778_v26 = vadd.f32 %v4324_v21, %v3249_v16 }
 0x1ee   : > { %1480 = vrot.lane.b32.xlu1 %v3645_v1, %s2642_s13  ;;  %v906_v48 = vmax.f32 %v442_v36, 0.0 }
 0x1f0   : > { %v1249_v57 = vpop.f32.mrf.mxu2  ;;  %v1362_v6 = vpop.f32.mrf.mxu3 }
 0x1f1   : > { %v1250_v51 = vadd.f32 %v1249_v57, %v1137_v53  ;;  %v1026_v29 = vpop.f32.mrf.mxu0  ;;  %v1139_v32 = vpop.f32.mrf.mxu1  ;;  %v896_v53 = vmax.f32 %v659_v39, 0.0  ;;  %v897_v57 = vmax.f32 %v772_v41, 0.0 }
 0x1f2   : > { %v1027_v22 = vadd.f32 %v3518_v9, %v1026_v29  ;;  %v4318_v29 = vld [vmem:[#allocation4_spill] sm:$0xff] }
 0x1f3   : > { %v3660_v31 = vadd.f32 %v1362_v6, %v1250_v51 }
 0x1f4   : > { %1073 = vmatmul.f32.gmra.mxu0 %v886_v47  ;;  %1186 = vmatmul.f32.gmra.mxu1 %v887_v15  ;;  %v1140_v52 = vadd.f32 %v1139_v32, %v1027_v22  ;;  %v436_v32 = vadd.f32 %v4318_v29, %v3243_v61  ;;  %v4319_v47 = vld [vmem:[#allocation19_spill] sm:$0xff]  ;;  %v4321_v22 = vld [vmem:[#allocation6_spill] sm:$0xff]  ;;  %v781_v29 = vadd.f32 %v3501_v25, %v3249_v16 }
 0x1f5   : > { %2146 = vst [vmem:[%s3538_s19 + $0x40] sm:$0xff] %v3660_v31  ;;  %1299 = vmatmul.f32.gmra.mxu2 %v888_v18  ;;  %1412 = vmatmul.f32.gmra.mxu3 %v889_v28  ;;  %v549_v15 = vadd.f32 %v4319_v47, %v3245_v11  ;;  %v4320_v18 = vld [vmem:[#allocation5_spill] sm:$0xff]  ;;  %v775_v49 = vadd.f32 %v4321_v22, %v3249_v16  ;;  %v4326_v25 = vld [vmem:[#allocation11_spill] sm:$0xff] }
 0x1f6   : > { %1482 = vrot.lane.b32.xlu2 %v3660_v31, %s2642_s13  ;;  %v662_v28 = vadd.f32 %v4320_v18, %v3247_v60 }
 0x1f8   : > { %v1252_v33 = vpop.f32.mrf.mxu2  ;;  %v1365_v3 = vpop.f32.mrf.mxu3 }
 0x1f9   : > { %v1253_v56 = vadd.f32 %v1252_v33, %v1140_v52  ;;  %v1029_v14 = vpop.f32.mrf.mxu0  ;;  %v1142_v42 = vpop.f32.mrf.mxu1 }
 0x1fa   : > { %v1030_v0 = vadd.f32 %v3518_v9, %v1029_v14  ;;  %v900_v14 = vmax.f32 %v662_v28, 0.0 }
 0x1fb   : > { %v3675_v7 = vadd.f32 %v1365_v3, %v1253_v56  ;;  %v898_v3 = vmax.f32 %v436_v32, 0.0  ;;  %v899_v56 = vmax.f32 %v549_v15, 0.0 }
 0x1fc   : > { %1076 = vmatmul.f32.gmra.mxu0 %v890_v55  ;;  %1189 = vmatmul.f32.gmra.mxu1 %v891_v35  ;;  %v1143_v30 = vadd.f32 %v1142_v42, %v1030_v0  ;;  %v901_v42 = vmax.f32 %v775_v49, 0.0  ;;  %v4323_v0 = vld [vmem:[#allocation8_spill] sm:$0xff] }
 0x1fd   : > { %2147 = vst [vmem:[%s3538_s19 + $0x48] sm:$0xff] %v3675_v7  ;;  %1302 = vmatmul.f32.gmra.mxu2 %v892_v40  ;;  %1415 = vmatmul.f32.gmra.mxu3 %v893_v34  ;;  %v4322_v40 = vld [vmem:[#allocation7_spill] sm:$0xff]  ;;  %v552_v59 = vadd.f32 %v4323_v0, %v3245_v11 }
 0x1fe   : > { %1484 = vrot.lane.b32.xlu0 %v3675_v7, %s2642_s13  ;;  %v439_v34 = vadd.f32 %v4322_v40, %v3243_v61 }
 0x200   : > { %v1255_v38 = vpop.f32.mrf.mxu2  ;;  %v1368_v20 = vpop.f32.mrf.mxu3 }
 0x201   : > { %v1256_v4 = vadd.f32 %v1255_v38, %v1143_v30  ;;  %v1032_v43 = vpop.f32.mrf.mxu0  ;;  %v1145_v46 = vpop.f32.mrf.mxu1 }
 0x202   : > { %v1033_v51 = vadd.f32 %v3518_v9, %v1032_v43  ;;  %v904_v43 = vmax.f32 %v665_v50, 0.0 }
 0x203   : > { %v3690_v6 = vadd.f32 %v1368_v20, %v1256_v4  ;;  %v902_v20 = vmax.f32 %v439_v34, 0.0  ;;  %v903_v4 = vmax.f32 %v552_v59, 0.0 }
 0x204   : > { %1079 = vmatmul.f32.gmra.mxu0 %v894_v13  ;;  %1192 = vmatmul.f32.gmra.mxu1 %v895_v27  ;;  %v1146_v54 = vadd.f32 %v1145_v46, %v1033_v51  ;;  %v905_v46 = vmax.f32 %v778_v26, 0.0  ;;  %v668_v51 = vadd.f32 %v3499_v8, %v3247_v60  ;;  %v445_v8 = vadd.f32 %v3503_v37, %v3243_v61 }
 0x205   : > { %2148 = vst [vmem:[%s3538_s19 + $0x50] sm:$0xff] %v3690_v6  ;;  %1305 = vmatmul.f32.gmra.mxu2 %v896_v53  ;;  %1418 = vmatmul.f32.gmra.mxu3 %v897_v57  ;;  %v4325_v53 = vld [vmem:[#allocation10_spill] sm:$0xff] }
 0x206   : > { %1486 = vrot.lane.b32.xlu1 %v3690_v6, %s2642_s13  ;;  %v555_v57 = vadd.f32 %v4325_v53, %v3245_v11  ;;  %v910_v61 = vmax.f32 %v445_v8, 0.0 }
 0x208   : > { %v1258_v44 = vpop.f32.mrf.mxu2  ;;  %v1371_v17 = vpop.f32.mrf.mxu3  ;;  %v907_v49 = vmax.f32 %v555_v57, 0.0 }
 0x209   : > { %v1259_v5 = vadd.f32 %v1258_v44, %v1146_v54  ;;  %v1035_v52 = vpop.f32.mrf.mxu0  ;;  %v1148_v33 = vpop.f32.mrf.mxu1  ;;  %v908_v54 = vmax.f32 %v668_v51, 0.0  ;;  %v909_v44 = vmax.f32 %v781_v29, 0.0 }
 0x20a   : > { %v1036_v35 = vadd.f32 %v3518_v9, %v1035_v52  ;;  %v558_v52 = vadd.f32 %v4326_v25, %v3245_v11 }
 0x20b   : > { %v3705_v55 = vadd.f32 %v1371_v17, %v1259_v5 }
 0x20c   : > { %1082 = vmatmul.f32.gmra.mxu0 %v898_v3  ;;  %1195 = vmatmul.f32.gmra.mxu1 %v899_v56  ;;  %v1149_v23 = vadd.f32 %v1148_v33, %v1036_v35  ;;  %v671_v33 = vadd.f32 %v3520_v58, %v3247_v60  ;;  %v4327_v3 = vld [vmem:[#allocation12_spill] sm:$0xff]  ;;  %v911_v37 = vmax.f32 %v558_v52, 0.0 }
 0x20d   : > { %2149 = vst [vmem:[%s3538_s19 + $0x58] sm:$0xff] %v3705_v55  ;;  %1308 = vmatmul.f32.gmra.mxu2 %v900_v14  ;;  %1421 = vmatmul.f32.gmra.mxu3 %v901_v42  ;;  %v784_v56 = vadd.f32 %v4327_v3, %v3249_v16 }
 0x20e   : > { %1488 = vrot.lane.b32.xlu2 %v3705_v55, %s2642_s13  ;;  %v912_v59 = vmax.f32 %v671_v33, 0.0 }
 0x20f   : > { %v913_v11 = vmax.f32 %v784_v56, 0.0 }
 0x210   : > { %v1261_v39 = vpop.f32.mrf.mxu2  ;;  %v1374_v63 = vpop.f32.mrf.mxu3 }
 0x211   : > { %v1262_v41 = vadd.f32 %v1261_v39, %v1149_v23  ;;  %v1038_v30 = vpop.f32.mrf.mxu0  ;;  %v1151_v38 = vpop.f32.mrf.mxu1 }
 0x212   : > { %v1039_v27 = vadd.f32 %v3518_v9, %v1038_v30 }
 0x213   : > { %v3720_v13 = vadd.f32 %v1374_v63, %v1262_v41 }
 0x214   : > { %1085 = vmatmul.f32.gmra.mxu0 %v902_v20  ;;  %1198 = vmatmul.f32.gmra.mxu1 %v903_v4  ;;  %v1152_v32 = vadd.f32 %v1151_v38, %v1039_v27 }
 0x215   : > { %2150 = vst [vmem:[%s3538_s19 + $0x60] sm:$0xff] %v3720_v13  ;;  %1311 = vmatmul.f32.gmra.mxu2 %v904_v43  ;;  %1424 = vmatmul.f32.gmra.mxu3 %v905_v46 }
 0x216   : > { %1490 = vrot.lane.b32.xlu0 %v3720_v13, %s2642_s13 }
 0x218   : > { %v1264_v47 = vpop.f32.mrf.mxu2  ;;  %v1377_v15 = vpop.f32.mrf.mxu3 }
 0x219   : > { %v1265_v18 = vadd.f32 %v1264_v47, %v1152_v32  ;;  %v1041_v28 = vpop.f32.mrf.mxu0  ;;  %v1154_v22 = vpop.f32.mrf.mxu1 }
 0x21a   : > { %v1042_v5 = vadd.f32 %v3518_v9, %v1041_v28 }
 0x21b   : > { %v3735_v17 = vadd.f32 %v1377_v15, %v1265_v18 }
 0x21c   : > { %1088 = vmatmul.f32.gmra.mxu0 %v906_v48  ;;  %1201 = vmatmul.f32.gmra.mxu1 %v907_v49  ;;  %v1155_v14 = vadd.f32 %v1154_v22, %v1042_v5 }
 0x21d   : > { %2151 = vst [vmem:[%s3538_s19 + $0x68] sm:$0xff] %v3735_v17  ;;  %1314 = vmatmul.f32.gmra.mxu2 %v908_v54  ;;  %1427 = vmatmul.f32.gmra.mxu3 %v909_v44 }
 0x21e   : > { %1492 = vrot.lane.b32.xlu1 %v3735_v17, %s2642_s13 }
 0x220   : > { %v1267_v42 = vpop.f32.mrf.mxu2  ;;  %v1380_v35 = vpop.f32.mrf.mxu3 }
 0x221   : > { %v1268_v40 = vadd.f32 %v1267_v42, %v1155_v14  ;;  %v1044_v34 = vpop.f32.mrf.mxu0  ;;  %v1157_v0 = vpop.f32.mrf.mxu1 }
 0x222   : > { %v1045_v21 = vadd.f32 %v3518_v9, %v1044_v34 }
 0x223   : > { %v3750_v50 = vadd.f32 %v1380_v35, %v1268_v40 }
 0x224   : > { %1091 = vmatmul.f32.gmra.mxu0 %v910_v61  ;;  %1204 = vmatmul.f32.gmra.mxu1 %v911_v37  ;;  %v1158_v60 = vadd.f32 %v1157_v0, %v1045_v21 }
 0x225   : > { %2152 = vst [vmem:[%s3538_s19 + $0x70] sm:$0xff] %v3750_v50  ;;  %1317 = vmatmul.f32.gmra.mxu2 %v912_v59  ;;  %1430 = vmatmul.f32.gmra.mxu3 %v913_v11 }
 0x226   : > { %1494 = vrot.lane.b32.xlu2 %v3750_v50, %s2642_s13 }
 0x228   : > { %v1467_v16 = vpop.permute.xlu0 %1466  ;;  %v1270_v58 = vpop.f32.mrf.mxu2 }
 0x229   : > { %v1271_v26 = vadd.f32 %v1270_v58, %v1158_v60  ;;  %v1383_v23 = vpop.f32.mrf.mxu3  ;;  %v1047_v39 = vpop.f32.mrf.mxu0  ;;  %v3760_v30 = vmax.f32 %v3540_v24, %v1467_v16 }
 0x22a   : > { %v1160_v63 = vpop.f32.mrf.mxu1  ;;  %v1048_v38 = vadd.f32 %v3518_v9, %v1047_v39 }
 0x22b   : > { %v3757_v41 = vadd.f32 %v1383_v23, %v1271_v26 }
 0x22c   : > { %v1161_v20 = vadd.f32 %v1160_v63, %v1048_v38 }
 0x22d   : > { %2153 = vst [vmem:[%s3538_s19 + $0x78] sm:$0xff] %v3757_v41  ;;  %1496 = vrot.lane.b32.xlu0 %v3757_v41, %s2642_s13 }
 0x22e   : > { %1722 = vrot.lane.b32.xlu2 %v3760_v30, %s2643_s11 }
 0x230   : > { %v1469_v4 = vpop.permute.xlu0 %1468  ;;  %v1273_v43 = vpop.f32.mrf.mxu2 }
 0x231   : > { %v1386_v46 = vpop.f32.mrf.mxu3  ;;  %v1274_v27 = vadd.f32 %v1273_v43, %v1161_v20  ;;  %v1050_v36 = vpop.f32.mrf.mxu0  ;;  %v3770_v57 = vmax.f32 %v3555_v45, %v1469_v4 }
 0x232   : > { %v1163_v53 = vpop.f32.mrf.mxu1  ;;  %v1051_v29 = vadd.f32 %v3518_v9, %v1050_v36  ;;  %v1475_v40 = vpop.permute.xlu2 %1474 }
 0x233   : > { %v3772_v51 = vadd.f32 %v1386_v46, %v1274_v27  ;;  %v3806_v21 = vmax.f32 %v3600_v12, %v1475_v40 }
 0x234   : > { %v1164_v32 = vadd.f32 %v1163_v53, %v1051_v29 }
 0x235   : > { %1724 = vrot.lane.b32.xlu0 %v3770_v57, %s2643_s11  ;;  %2154 = vst [vmem:[%s3538_s19 + $0x80] sm:$0xff] %v3772_v51  ;;  %1498 = vrot.lane.b32.xlu1 %v3772_v51, %s2642_s13 }
 0x238   : > { %v1471_v47 = vpop.permute.xlu1 %1470  ;;  %v1276_v15 = vpop.f32.mrf.mxu2 }
 0x239   : > { %v1389_v18 = vpop.f32.mrf.mxu3  ;;  %v1277_v28 = vadd.f32 %v1276_v15, %v1164_v32  ;;  %v1053_v22 = vpop.f32.mrf.mxu0  ;;  %v3782_v49 = vmax.f32 %v3570_v2, %v1471_v47 }
 0x23a   : > { %v1166_v48 = vpop.f32.mrf.mxu1  ;;  %v1054_v44 = vadd.f32 %v3518_v9, %v1053_v22  ;;  %v1477_v58 = vpop.permute.xlu2 %1476 }
 0x23b   : > { %v3784_v54 = vadd.f32 %v1389_v18, %v1277_v28  ;;  %v3818_v4 = vmax.f32 %v3615_v10, %v1477_v58 }
 0x23c   : > { %v1167_v5 = vadd.f32 %v1166_v48, %v1054_v44 }
 0x23d   : > { %2155 = vst [vmem:[%s3538_s19 + $0x88] sm:$0xff] %v3784_v54  ;;  %1726 = vrot.lane.b32.xlu1 %v3782_v49, %s2643_s11  ;;  %1500 = vrot.lane.b32.xlu2 %v3784_v54, %s2642_s13 }
 0x240   : > { %v1473_v8 = vpop.permute.xlu1 %1472  ;;  %v1279_v25 = vpop.f32.mrf.mxu2 }
 0x241   : > { %v1392_v52 = vpop.f32.mrf.mxu3  ;;  %v1280_v33 = vadd.f32 %v1279_v25, %v1167_v5  ;;  %v1056_v3 = vpop.f32.mrf.mxu0  ;;  %v3794_v14 = vmax.f32 %v3585_v62, %v1473_v8 }
 0x242   : > { %v1169_v56 = vpop.f32.mrf.mxu1  ;;  %v1057_v35 = vadd.f32 %v3518_v9, %v1056_v3 }
 0x243   : > { %v3796_v42 = vadd.f32 %v1392_v52, %v1280_v33 }
 0x244   : > { %v1170_v34 = vadd.f32 %v1169_v56, %v1057_v35 }
 0x245   : > { %2156 = vst [vmem:[%s3538_s19 + $0x90] sm:$0xff] %v3796_v42  ;;  %1728 = vrot.lane.b32.xlu2 %v3794_v14, %s2643_s11  ;;  %1502 = vrot.lane.b32.xlu0 %v3796_v42, %s2642_s13 }
 0x248   : > { %v1282_v0 = vpop.f32.mrf.mxu2 }
 0x249   : > { %v1395_v61 = vpop.f32.mrf.mxu3  ;;  %v1283_v37 = vadd.f32 %v1282_v0, %v1170_v34  ;;  %v1059_v59 = vpop.f32.mrf.mxu0 }
 0x24a   : > { %v1172_v11 = vpop.f32.mrf.mxu1  ;;  %v1060_v16 = vadd.f32 %v3518_v9, %v1059_v59 }
 0x24b   : > { %v3808_v60 = vadd.f32 %v1395_v61, %v1283_v37 }
 0x24c   : > { %v1173_v26 = vadd.f32 %v1172_v11, %v1060_v16 }
 0x24d   : > { %2157 = vst [vmem:[%s3538_s19 + $0x98] sm:$0xff] %v3808_v60  ;;  %1504 = vrot.lane.b32.xlu1 %v3808_v60, %s2642_s13  ;;  %1730 = vrot.lane.b32.xlu0 %v3806_v21, %s2643_s11 }
 0x250   : > { %v1285_v23 = vpop.f32.mrf.mxu2  ;;  %v1483_v40 = vpop.permute.xlu2 %1482 }
 0x251   : > { %v1398_v39 = vpop.f32.mrf.mxu3  ;;  %v1286_v63 = vadd.f32 %v1285_v23, %v1173_v26  ;;  %v1062_v38 = vpop.f32.mrf.mxu0  ;;  %v3854_v16 = vmax.f32 %v3660_v31, %v1483_v40 }
 0x252   : > { %v1175_v20 = vpop.f32.mrf.mxu1  ;;  %v1063_v46 = vadd.f32 %v3518_v9, %v1062_v38 }
 0x253   : > { %v3820_v43 = vadd.f32 %v1398_v39, %v1286_v63 }
 0x254   : > { %v1176_v27 = vadd.f32 %v1175_v20, %v1063_v46 }
 0x255   : > { %2158 = vst [vmem:[%s3538_s19 + $0xa0] sm:$0xff] %v3820_v43  ;;  %1732 = vrot.lane.b32.xlu1 %v3818_v4, %s2643_s11  ;;  %1506 = vrot.lane.b32.xlu2 %v3820_v43, %s2642_s13 }
 0x258   : > { %v1479_v36 = vpop.permute.xlu0 %1478  ;;  %v1288_v53 = vpop.f32.mrf.mxu2 }
 0x259   : > { %v1401_v29 = vpop.f32.mrf.mxu3  ;;  %v1289_v32 = vadd.f32 %v1288_v53, %v1176_v27  ;;  %v1065_v47 = vpop.f32.mrf.mxu0  ;;  %v3830_v18 = vmax.f32 %v3630_v19, %v1479_v36 }
 0x25a   : > { %v1178_v15 = vpop.f32.mrf.mxu1  ;;  %v1066_v22 = vadd.f32 %v3518_v9, %v1065_v47 }
 0x25b   : > { %v3832_v28 = vadd.f32 %v1401_v29, %v1289_v32 }
 0x25c   : > { %v1179_v48 = vadd.f32 %v1178_v15, %v1066_v22 }
 0x25d   : > { %2159 = vst [vmem:[%s3538_s19 + $0xa8] sm:$0xff] %v3832_v28  ;;  %1508 = vrot.lane.b32.xlu0 %v3832_v28, %s2642_s13  ;;  %1734 = vrot.lane.b32.xlu2 %v3830_v18, %s2643_s11 }
 0x260   : > { %v1481_v44 = vpop.permute.xlu1 %1480  ;;  %v1291_v5 = vpop.f32.mrf.mxu2 }
 0x261   : > { %v1404_v8 = vpop.f32.mrf.mxu3  ;;  %v1292_v25 = vadd.f32 %v1291_v5, %v1179_v48  ;;  %v1068_v52 = vpop.f32.mrf.mxu0  ;;  %v3842_v3 = vmax.f32 %v3645_v1, %v1481_v44 }
 0x262   : > { %v1181_v33 = vpop.f32.mrf.mxu1  ;;  %v1069_v35 = vadd.f32 %v3518_v9, %v1068_v52 }
 0x263   : > { %v3844_v56 = vadd.f32 %v1404_v8, %v1292_v25 }
 0x264   : > { %v1182_v34 = vadd.f32 %v1181_v33, %v1069_v35 }
 0x265   : > { %2160 = vst [vmem:[%s3538_s19 + $0xb0] sm:$0xff] %v3844_v56  ;;  %1510 = vrot.lane.b32.xlu1 %v3844_v56, %s2642_s13  ;;  %1736 = vrot.lane.b32.xlu0 %v3842_v3, %s2643_s11 }
 0x268   : > { %v1294_v0 = vpop.f32.mrf.mxu2  ;;  %v1489_v33 = vpop.permute.xlu2 %1488 }
 0x269   : > { %v1407_v61 = vpop.f32.mrf.mxu3  ;;  %v1295_v37 = vadd.f32 %v1294_v0, %v1182_v34  ;;  %v1071_v59 = vpop.f32.mrf.mxu0 }
 0x26a   : > { %v1184_v11 = vpop.f32.mrf.mxu1  ;;  %v1072_v26 = vadd.f32 %v3518_v9, %v1071_v59  ;;  %v3890_v59 = vmax.f32 %v3705_v55, %v1489_v33 }
 0x26b   : > { %v3856_v58 = vadd.f32 %v1407_v61, %v1295_v37 }
 0x26c   : > { %v1185_v23 = vadd.f32 %v1184_v11, %v1072_v26 }
 0x26d   : > { %2161 = vst [vmem:[%s3538_s19 + $0xb8] sm:$0xff] %v3856_v58  ;;  %1738 = vrot.lane.b32.xlu1 %v3854_v16, %s2643_s11  ;;  %1512 = vrot.lane.b32.xlu2 %v3856_v58, %s2642_s13 }
 0x270   : > { %v1485_v39 = vpop.permute.xlu0 %1484  ;;  %v1297_v63 = vpop.f32.mrf.mxu2 }
 0x271   : > { %v1410_v38 = vpop.f32.mrf.mxu3  ;;  %v1298_v20 = vadd.f32 %v1297_v63, %v1185_v23  ;;  %v1074_v46 = vpop.f32.mrf.mxu0  ;;  %v3866_v36 = vmax.f32 %v3675_v7, %v1485_v39 }
 0x272   : > { %v1187_v27 = vpop.f32.mrf.mxu1  ;;  %v1075_v29 = vadd.f32 %v3518_v9, %v1074_v46 }
 0x273   : > { %v3868_v53 = vadd.f32 %v1410_v38, %v1298_v20 }
 0x274   : > { %v1188_v32 = vadd.f32 %v1187_v27, %v1075_v29 }
 0x275   : > { %2162 = vst [vmem:[%s3538_s19 + $0xc0] sm:$0xff] %v3868_v53  ;;  %1514 = vrot.lane.b32.xlu0 %v3868_v53, %s2642_s13  ;;  %1740 = vrot.lane.b32.xlu2 %v3866_v36, %s2643_s11 }
 0x278   : > { %v1487_v47 = vpop.permute.xlu1 %1486  ;;  %v1300_v15 = vpop.f32.mrf.mxu2 }
 0x279   : > { %v1413_v22 = vpop.f32.mrf.mxu3  ;;  %v1301_v48 = vadd.f32 %v1300_v15, %v1188_v32  ;;  %v1077_v44 = vpop.f32.mrf.mxu0  ;;  %v3878_v8 = vmax.f32 %v3690_v6, %v1487_v47  ;;  %v2601_v47 = vld [vmem:[%s4268_s4] ss:$0 sm:$0xff] }
 0x27a   : > { %v1190_v5 = vpop.f32.mrf.mxu1  ;;  %v1078_v52 = vadd.f32 %v3518_v9, %v1077_v44 }
 0x27b   : > { %v3880_v25 = vadd.f32 %v1413_v22, %v1301_v48 }
 0x27c   : > { %v1191_v35 = vadd.f32 %v1190_v5, %v1078_v52 }
 0x27d   : > { %2163 = vst [vmem:[%s3538_s19 + $0xc8] sm:$0xff] %v3880_v25  ;;  %1516 = vrot.lane.b32.xlu1 %v3880_v25, %s2642_s13  ;;  %1742 = vrot.lane.b32.xlu0 %v3878_v8, %s2643_s11 }
 0x280   : > { %v1303_v40 = vpop.f32.mrf.mxu2  ;;  %v1495_v23 = vpop.permute.xlu2 %1494 }
 0x281   : > { %v1416_v34 = vpop.f32.mrf.mxu3  ;;  %v1304_v0 = vadd.f32 %v1303_v40, %v1191_v35  ;;  %v1080_v61 = vpop.f32.mrf.mxu0 }
 0x282   : > { %v1193_v37 = vpop.f32.mrf.mxu1  ;;  %v1081_v26 = vadd.f32 %v3518_v9, %v1080_v61 }
 0x283   : > { %v3892_v11 = vadd.f32 %v1416_v34, %v1304_v0 }
 0x284   : > { %v1194_v39 = vadd.f32 %v1193_v37, %v1081_v26 }
 0x285   : > { %2164 = vst [vmem:[%s3538_s19 + $0xd0] sm:$0xff] %v3892_v11  ;;  %1744 = vrot.lane.b32.xlu1 %v3890_v59, %s2643_s11  ;;  %1518 = vrot.lane.b32.xlu2 %v3892_v11, %s2642_s13 }
 0x288   : > { %v1491_v63 = vpop.permute.xlu0 %1490  ;;  %v1306_v38 = vpop.f32.mrf.mxu2 }
 0x289   : > { %v1419_v20 = vpop.f32.mrf.mxu3  ;;  %v1307_v46 = vadd.f32 %v1306_v38, %v1194_v39  ;;  %v1083_v27 = vpop.f32.mrf.mxu0  ;;  %v3902_v32 = vmax.f32 %v3720_v13, %v1491_v63 }
 0x28a   : > { %v1196_v29 = vpop.f32.mrf.mxu1  ;;  %v1084_v15 = vadd.f32 %v2601_v47, %v1083_v27  ;;  %v1723_v40 = vpop.permute.xlu2 %1722  ;;  %v3928_v27 = vmax.f32 %v3750_v50, %v1495_v23 }
 0x28b   : > { %v3904_v9 = vadd.f32 %v1419_v20, %v1307_v46  ;;  %v1818_v37 = vsub.f32 %v3540_v24, %v1723_v40 }
 0x28c   : > { %v1197_v22 = vadd.f32 %v1196_v29, %v1084_v15 }
 0x28d   : > { %2165 = vst [vmem:[%s3538_s19 + $0xd8] sm:$0xff] %v3904_v9  ;;  %1520 = vrot.lane.b32.xlu0 %v3904_v9, %s2642_s13  ;;  %1746 = vrot.lane.b32.xlu2 %v3902_v32, %s2643_s11  ;;  %v1850_v46 = vmul.f32 1.442695, %v1818_v37 }
 0x28f   : > { %2409 = vpow2.f32 %v1850_v46 }
 0x290   : > { %v1493_v48 = vpop.permute.xlu1 %1492  ;;  %v1309_v44 = vpop.f32.mrf.mxu2 }
 0x291   : > { %v1422_v5 = vpop.f32.mrf.mxu3  ;;  %v1310_v52 = vadd.f32 %v1309_v44, %v1197_v22  ;;  %v1086_v33 = vpop.f32.mrf.mxu0  ;;  %v3916_v34 = vmax.f32 %v3735_v17, %v1493_v48 }
 0x292   : > { %v1199_v35 = vpop.f32.mrf.mxu1  ;;  %v1087_v61 = vadd.f32 %v2601_v47, %v1086_v33 }
 0x293   : > { %v3918_v0 = vadd.f32 %v1422_v5, %v1310_v52 }
 0x294   : > { %v1200_v26 = vadd.f32 %v1199_v35, %v1087_v61 }
 0x295   : > { %2166 = vst [vmem:[%s3538_s19 + $0xe0] sm:$0xff] %v3918_v0  ;;  %1522 = vrot.lane.b32.xlu1 %v3918_v0, %s2642_s13  ;;  %1748 = vrot.lane.b32.xlu0 %v3916_v34, %s2643_s11  ;;  %v2410_v61 = vpop.eup %2409 }
 0x297   : > { %v1501_v48 = vpop.permute.xlu2 %1500 }
 0x298   : > { %v1312_v39 = vpop.f32.mrf.mxu2 }
 0x299   : > { %v1425_v63 = vpop.f32.mrf.mxu3  ;;  %v1313_v38 = vadd.f32 %v1312_v39, %v1200_v26  ;;  %v1089_v20 = vpop.f32.mrf.mxu0 }
 0x29a   : > { %v1090_v15 = vadd.f32 %v2601_v47, %v1089_v20  ;;  %v1202_v22 = vpop.f32.mrf.mxu1 }
 0x29b   : > { %v3930_v29 = vadd.f32 %v1425_v63, %v1313_v38 }
 0x29c   : > { %v1203_v44 = vadd.f32 %v1202_v22, %v1090_v15 }
 0x29d   : > { %2167 = vst [vmem:[%s3538_s19 + $0xe8] sm:$0xff] %v3930_v29  ;;  %1750 = vrot.lane.b32.xlu1 %v3928_v27, %s2643_s11  ;;  %1524 = vrot.lane.b32.xlu2 %v3930_v29, %s2642_s13 }
 0x29f   : > { %v1497_v24 = vpop.permute.xlu0 %1496  ;;  %v1729_v46 = vpop.permute.xlu2 %1728 }
 0x2a0   : > { %v1315_v5 = vpop.f32.mrf.mxu2  ;;  %v3941_v37 = vmax.f32 %v3757_v41, %v1497_v24 }
 0x2a1   : > { %v1428_v23 = vpop.f32.mrf.mxu3  ;;  %v1316_v52 = vadd.f32 %v1315_v5, %v1203_v44  ;;  %v1092_v33 = vpop.f32.mrf.mxu0 }
 0x2a2   : > { %v1093_v40 = vadd.f32 %v2601_v47, %v1092_v33  ;;  %v1205_v26 = vpop.f32.mrf.mxu1 }
 0x2a3   : > { %v3938_v35 = vadd.f32 %v1428_v23, %v1316_v52 }
 0x2a4   : > { %v1206_v63 = vadd.f32 %v1205_v26, %v1093_v40 }
 0x2a5   : > { %2168 = vst [vmem:[%s3538_s19 + $0xf0] sm:$0xff] %v3938_v35  ;;  %1946 = vrot.lane.b32.xlu1 %v2410_v61, %s2642_s13  ;;  %1526 = vrot.lane.b32.xlu0 %v3938_v35, %s2642_s13 }
 0x2a6   : > { %1752 = vrot.lane.b32.xlu2 %v3941_v37, %s2643_s11 }
 0x2a7   : > { %v1725_v39 = vpop.permute.xlu0 %1724  ;;  %v1499_v38 = vpop.permute.xlu1 %1498 }
 0x2a8   : > { %v1819_v47 = vsub.f32 %v3555_v45, %v1725_v39  ;;  %v1318_v20 = vpop.f32.mrf.mxu2  ;;  %v3952_v44 = vmax.f32 %v3772_v51, %v1499_v38  ;;  %v1821_v45 = vsub.f32 %v3585_v62, %v1729_v46  ;;  %v3966_v39 = vmax.f32 %v3784_v54, %v1501_v48 }
 0x2a9   : > { %v1319_v22 = vadd.f32 %v1318_v20, %v1206_v63  ;;  %v1431_v24 = vpop.f32.mrf.mxu3 }
 0x2aa   : > { %v1852_v15 = vmul.f32 1.442695, %v1819_v47  ;;  %v1856_v61 = vmul.f32 1.442695, %v1821_v45 }
 0x2ab   : > { %v3954_v5 = vadd.f32 %v1431_v24, %v1319_v22 }
 0x2ac   : > { %2411 = vpow2.f32 %v1852_v15 }
 0x2ad   : > { %2169 = vst [vmem:[%s3538_s19 + $0xf8] sm:$0xff] %v3954_v5  ;;  %1528 = vrot.lane.b32.xlu1 %v3954_v5, %s2642_s13  ;;  %1754 = vrot.lane.b32.xlu0 %v3952_v44, %s2643_s11 }
 0x2af   : > { %v1727_v23 = vpop.permute.xlu1 %1726  ;;  %v1507_v40 = vpop.permute.xlu2 %1506 }
 0x2b0   : > { %v1820_v52 = vsub.f32 %v3570_v2, %v1727_v23  ;;  %v3983_v23 = vmax.f32 %v3820_v43, %v1507_v40 }
 0x2b2   : > { %v2412_v33 = vpop.eup %2411  ;;  %v1854_v26 = vmul.f32 1.442695, %v1820_v52 }
 0x2b3   : > { %1948 = vrot.lane.b32.xlu2 %v2412_v33, %s2642_s13 }
 0x2b4   : > { %2413 = vpow2.f32 %v1854_v26 }
 0x2b5   : > { %1756 = vrot.lane.b32.xlu1 %v3966_v39, %s2643_s11  ;;  %2415 = vpow2.f32 %v1856_v61 }
 0x2b7   : > { %v1503_v63 = vpop.permute.xlu0 %1502  ;;  %v1735_v2 = vpop.permute.xlu2 %1734 }
 0x2b8   : > { %v3971_v62 = vmax.f32 %v3796_v42, %v1503_v63  ;;  %v1824_v48 = vsub.f32 %v3630_v19, %v1735_v2 }
 0x2ba   : > { %v2414_v38 = vpop.eup %2413  ;;  %v1862_v24 = vmul.f32 1.442695, %v1824_v48 }
 0x2bb   : > { %1758 = vrot.lane.b32.xlu2 %v3971_v62, %s2643_s11  ;;  %1950 = vrot.lane.b32.xlu0 %v2414_v38, %s2642_s13  ;;  %v2416_v47 = vpop.eup %2415 }
 0x2bd   : > { %1952 = vrot.lane.b32.xlu1 %v2416_v47, %s2642_s13 }
 0x2bf   : > { %v1505_v20 = vpop.permute.xlu1 %1504  ;;  %v1731_v46 = vpop.permute.xlu0 %1730 }
 0x2c0   : > { %v3979_v15 = vmax.f32 %v3808_v60, %v1505_v20  ;;  %v1822_v22 = vsub.f32 %v3600_v12, %v1731_v46 }
 0x2c2   : > { %v1858_v45 = vmul.f32 1.442695, %v1822_v22 }
 0x2c3   : > { %1760 = vrot.lane.b32.xlu0 %v3979_v15, %s2643_s11 }
 0x2c4   : > { %2417 = vpow2.f32 %v1858_v45 }
 0x2c5   : > { %1762 = vrot.lane.b32.xlu1 %v3983_v23, %s2643_s11  ;;  %2419 = vpow2.f32 %v1862_v24 }
 0x2c7   : > { %v1733_v19 = vpop.permute.xlu1 %1732  ;;  %v1513_v52 = vpop.permute.xlu2 %1512 }
 0x2c8   : > { %v1823_v33 = vsub.f32 %v3615_v10, %v1733_v19  ;;  %v3997_v20 = vmax.f32 %v3856_v58, %v1513_v52 }
 0x2ca   : > { %v2418_v61 = vpop.eup %2417  ;;  %v1860_v26 = vmul.f32 1.442695, %v1823_v33 }
 0x2cb   : > { %1954 = vrot.lane.b32.xlu2 %v2418_v61, %s2642_s13  ;;  %v2420_v12 = vpop.eup %2419 }
 0x2cc   : > { %2421 = vpow2.f32 %v1860_v26 }
 0x2cd   : > { %1958 = vrot.lane.b32.xlu1 %v2420_v12, %s2642_s13 }
 0x2cf   : > { %v1741_v40 = vpop.permute.xlu2 %1740  ;;  %v1509_v63 = vpop.permute.xlu0 %1508 }
 0x2d0   : > { %v1827_v38 = vsub.f32 %v3675_v7, %v1741_v40  ;;  %v3994_v2 = vmax.f32 %v3832_v28, %v1509_v63 }
 0x2d2   : > { %v2422_v47 = vpop.eup %2421  ;;  %v1868_v48 = vmul.f32 1.442695, %v1827_v38 }
 0x2d3   : > { %1956 = vrot.lane.b32.xlu0 %v2422_v47, %s2642_s13  ;;  %1764 = vrot.lane.b32.xlu2 %v3994_v2, %s2643_s11 }
 0x2d4   : > { %2423 = vpow2.f32 %v1868_v48 }
 0x2d5   : > { %1768 = vrot.lane.b32.xlu1 %v3997_v20, %s2643_s11 }
 0x2d7   : > { %v1511_v10 = vpop.permute.xlu1 %1510  ;;  %v1737_v46 = vpop.permute.xlu0 %1736 }
 0x2d8   : > { %v4005_v7 = vmax.f32 %v3844_v56, %v1511_v10  ;;  %v1825_v22 = vsub.f32 %v3645_v1, %v1737_v46 }
 0x2da   : > { %v1864_v24 = vmul.f32 1.442695, %v1825_v22  ;;  %v2424_v45 = vpop.eup %2423 }
 0x2db   : > { %1766 = vrot.lane.b32.xlu0 %v4005_v7, %s2643_s11 }
 0x2dc   : > { %2425 = vpow2.f32 %v1864_v24 }
 0x2dd   : > { %1964 = vrot.lane.b32.xlu1 %v2424_v45, %s2642_s13 }
 0x2df   : > { %v1739_v19 = vpop.permute.xlu1 %1738  ;;  %v1519_v52 = vpop.permute.xlu2 %1518 }
 0x2e0   : > { %v1826_v33 = vsub.f32 %v3660_v31, %v1739_v19  ;;  %v4013_v12 = vmax.f32 %v3892_v11, %v1519_v52 }
 0x2e2   : > { %v2426_v61 = vpop.eup %2425  ;;  %v1866_v26 = vmul.f32 1.442695, %v1826_v33 }
 0x2e3   : > { %1960 = vrot.lane.b32.xlu2 %v2426_v61, %s2642_s13 }
 0x2e4   : > { %2427 = vpow2.f32 %v1866_v26 }
 0x2e5   : > { %1774 = vrot.lane.b32.xlu1 %v4013_v12, %s2643_s11 }
 0x2e7   : > { %v1747_v1 = vpop.permute.xlu2 %1746  ;;  %v1515_v40 = vpop.permute.xlu0 %1514 }
 0x2e8   : > { %v1830_v63 = vsub.f32 %v3720_v13, %v1747_v1  ;;  %v4020_v38 = vmax.f32 %v3868_v53, %v1515_v40 }
 0x2ea   : > { %v2428_v47 = vpop.eup %2427  ;;  %v1874_v31 = vmul.f32 1.442695, %v1830_v63 }
 0x2eb   : > { %1962 = vrot.lane.b32.xlu0 %v2428_v47, %s2642_s13  ;;  %1770 = vrot.lane.b32.xlu2 %v4020_v38, %s2643_s11 }
 0x2ec   : > { %2429 = vpow2.f32 %v1874_v31 }
 0x2ef   : > { %v1517_v48 = vpop.permute.xlu1 %1516  ;;  %v1743_v10 = vpop.permute.xlu0 %1742 }
 0x2f0   : > { %v4026_v46 = vmax.f32 %v3880_v25, %v1517_v48  ;;  %v1828_v22 = vsub.f32 %v3690_v6, %v1743_v10  ;;  %v2602_v6 = vld [vmem:[%s3538_s19 + $0x8] sm:$0xff] }
 0x2f1   : > { %v1595_v1 = vsub.f32 %v2602_v6, %v3770_v57 }
 0x2f2   : > { %v2430_v13 = vpop.eup %2429  ;;  %v1870_v24 = vmul.f32 1.442695, %v1828_v22 }
 0x2f3   : > { %1772 = vrot.lane.b32.xlu0 %v4026_v46, %s2643_s11  ;;  %1970 = vrot.lane.b32.xlu1 %v2430_v13, %s2642_s13  ;;  %v1628_v48 = vmul.f32 1.442695, %v1595_v1 }
 0x2f4   : > { %2431 = vpow2.f32 %v1870_v24 }
 0x2f7   : > { %v1745_v45 = vpop.permute.xlu1 %1744  ;;  %v1525_v19 = vpop.permute.xlu2 %1524 }
 0x2f8   : > { %v1829_v52 = vsub.f32 %v3705_v55, %v1745_v45  ;;  %v4034_v33 = vmax.f32 %v3930_v29, %v1525_v19 }
 0x2fa   : > { %v2432_v61 = vpop.eup %2431  ;;  %v1872_v26 = vmul.f32 1.442695, %v1829_v52 }
 0x2fb   : > { %1780 = vrot.lane.b32.xlu1 %v4034_v33, %s2643_s11  ;;  %1966 = vrot.lane.b32.xlu2 %v2432_v61, %s2642_s13  ;;  %v2603_v61 = vld [vmem:[%s3538_s19] sm:$0xff] }
 0x2fc   : > { %2433 = vpow2.f32 %v1872_v26  ;;  %v1594_v26 = vsub.f32 %v2603_v61, %v3760_v30 }
 0x2ff   : > { %v1521_v40 = vpop.permute.xlu0 %1520 }
 0x300   : > { %v1753_v63 = vpop.permute.xlu2 %1752  ;;  %v4042_v47 = vmax.f32 %v3904_v9, %v1521_v40 }
 0x301   : > { %v1833_v55 = vsub.f32 %v3757_v41, %v1753_v63 }
 0x302   : > { %v2434_v31 = vpop.eup %2433 }
 0x303   : > { %v1880_v10 = vmul.f32 1.442695, %v1833_v55  ;;  %1968 = vrot.lane.b32.xlu0 %v2434_v31, %s2642_s13  ;;  %1776 = vrot.lane.b32.xlu2 %v4042_v47, %s2643_s11 }
 0x305   : > { %2435 = vpow2.f32 %v1880_v10 }
 0x306   : > { %2437 = vpow2.f32 %v1628_v48 }
 0x307   : > { %v1523_v22 = vpop.permute.xlu1 %1522  ;;  %v1749_v57 = vpop.permute.xlu0 %1748 }
 0x308   : > { %v4049_v13 = vmax.f32 %v3918_v0, %v1523_v22  ;;  %v1831_v24 = vsub.f32 %v3735_v17, %v1749_v57  ;;  %v1626_v17 = vmul.f32 1.442695, %v1594_v26  ;;  %v2604_v57 = vld [vmem:[%s3538_s19 + $0x20] sm:$0xff] }
 0x309   : > { %v1598_v30 = vsub.f32 %v2604_v57, %v3806_v21 }
 0x30a   : > { %v1876_v45 = vmul.f32 1.442695, %v1831_v24 }
 0x30b   : > { %v2436_v41 = vpop.eup %2435  ;;  %1778 = vrot.lane.b32.xlu0 %v4049_v13, %s2643_s11  ;;  %v1634_v26 = vmul.f32 1.442695, %v1598_v30 }
 0x30c   : > { %v2438_v19 = vpop.eup %2437  ;;  %2439 = vpow2.f32 %v1876_v45  ;;  %1976 = vrot.lane.b32.xlu1 %v2436_v41, %s2642_s13 }
 0x30d   : > { %v1949_v52 = vpop.permute.xlu2 %1948 }
 0x30e   : > { %v2043_v6 = vadd.f32 %v2438_v19, %v1949_v52 }
 0x30f   : > { %v1751_v1 = vpop.permute.xlu1 %1750 }
 0x310   : > { %2441 = vrcp.f32 %v2043_v6  ;;  %v1832_v40 = vsub.f32 %v3750_v50, %v1751_v1 }
 0x312   : > { %v2440_v63 = vpop.eup %2439  ;;  %v1878_v55 = vmul.f32 1.442695, %v1832_v40 }
 0x313   : > { %1972 = vrot.lane.b32.xlu2 %v2440_v63, %s2642_s13 }
 0x314   : > { %2443 = vpow2.f32 %v1878_v55  ;;  %v2606_v55 = vld [vmem:[%s3538_s19 + $0x18] sm:$0xff] }
 0x315   : > { %v1759_v31 = vpop.permute.xlu2 %1758  ;;  %2445 = vpow2.f32 %v1626_v17 }
 0x316   : > { %v2442_v48 = vpop.eup %2441  ;;  %v1836_v10 = vsub.f32 %v3796_v42, %v1759_v31  ;;  %v1597_v31 = vsub.f32 %v2606_v55, %v3794_v14 }
 0x317   : > { %v2107_v22 = vmul.f32 %v2442_v48, %v2438_v19  ;;  %v1947_v45 = vpop.permute.xlu1 %1946  ;;  %v1527_v41 = vpop.permute.xlu0 %1526  ;;  %v2605_v19 = vld [vmem:[%s3538_s19 + $0x10] sm:$0xff] }
 0x318   : > { %v1886_v24 = vmul.f32 1.442695, %v1836_v10  ;;  %v4063_v50 = vmax.f32 %v3938_v35, %v1527_v41  ;;  %v1596_v6 = vsub.f32 %v2605_v19, %v3782_v49 }
 0x319   : > { %2204 = vrot.lane.b32.xlu1 %v2107_v22, %s2643_s11  ;;  %v1632_v22 = vmul.f32 1.442695, %v1597_v31 }
 0x31a   : > { %2447 = vpow2.f32 %v1886_v24  ;;  %v2444_v52 = vpop.eup %2443  ;;  %v1630_v10 = vmul.f32 1.442695, %v1596_v6 }
 0x31b   : > { %v2446_v61 = vpop.eup %2445  ;;  %1974 = vrot.lane.b32.xlu0 %v2444_v52, %s2642_s13  ;;  %1782 = vrot.lane.b32.xlu2 %v4063_v50, %s2643_s11  ;;  %2449 = vpow2.f32 %v1634_v26 }
 0x31c   : > { %v2042_v42 = vadd.f32 %v2446_v61, %v1947_v45 }
 0x31e   : > { %2451 = vrcp.f32 %v2042_v42 }
 0x31f   : > { %v1529_v1 = vpop.permute.xlu1 %1528  ;;  %v1755_v40 = vpop.permute.xlu0 %1754 }
 0x320   : > { %v2448_v21 = vpop.eup %2447  ;;  %v4072_v17 = vmax.f32 %v3954_v5, %v1529_v1  ;;  %v1834_v63 = vsub.f32 %v3772_v51, %v1755_v40 }
 0x321   : > { %1982 = vrot.lane.b32.xlu1 %v2448_v21, %s2642_s13  ;;  %v2450_v49 = vpop.eup %2449 }
 0x322   : > { %v1882_v48 = vmul.f32 1.442695, %v1834_v63  ;;  %v2607_v63 = vld [vmem:[%s3538_s19 + $0x38] sm:$0xff] }
 0x323   : > { %1784 = vrot.lane.b32.xlu0 %v4072_v17, %s2643_s11 }
 0x324   : > { %2453 = vpow2.f32 %v1882_v48  ;;  %v2452_v30 = vpop.eup %2451 }
 0x325   : > { %v1955_v57 = vpop.permute.xlu2 %1954  ;;  %2455 = vpow2.f32 %v1630_v10  ;;  %v2106_v41 = vmul.f32 %v2452_v30, %v2446_v61  ;;  %v2608_v10 = vld [vmem:[%s3538_s19 + $0x30] sm:$0xff] }
 0x326   : > { %v2046_v24 = vadd.f32 %v2450_v49, %v1955_v57 }
 0x327   : > { %v1757_v45 = vpop.permute.xlu1 %1756 }
 0x328   : > { %2457 = vrcp.f32 %v2046_v24  ;;  %v1835_v51 = vsub.f32 %v3784_v54, %v1757_v45  ;;  %v1601_v54 = vsub.f32 %v2607_v63, %v3842_v3  ;;  %v2609_v45 = vld [vmem:[%s3538_s19 + $0x28] sm:$0xff] }
 0x329   : > { %2459 = vpow2.f32 %v1632_v22  ;;  %v1600_v22 = vsub.f32 %v2608_v10, %v3830_v18 }
 0x32a   : > { %v2454_v14 = vpop.eup %2453  ;;  %v1884_v52 = vmul.f32 1.442695, %v1835_v51  ;;  %v1640_v30 = vmul.f32 1.442695, %v1601_v54  ;;  %v1599_v51 = vsub.f32 %v2609_v45, %v3818_v4 }
 0x32b   : > { %2202 = vrot.lane.b32.xlu0 %v2106_v41, %s2643_s11  ;;  %1978 = vrot.lane.b32.xlu2 %v2454_v14, %s2642_s13  ;;  %v2456_v26 = vpop.eup %2455 }
 0x32c   : > { %2461 = vpow2.f32 %v1884_v52 }
 0x32d   : > { %v1765_v42 = vpop.permute.xlu2 %1764  ;;  %v1951_v21 = vpop.permute.xlu0 %1950 }
 0x32e   : > { %v2458_v19 = vpop.eup %2457  ;;  %v1839_v6 = vsub.f32 %v3832_v28, %v1765_v42  ;;  %v2044_v1 = vadd.f32 %v2456_v26, %v1951_v21  ;;  %v1638_v28 = vmul.f32 1.442695, %v1600_v22 }
 0x32f   : > { %v2460_v40 = vpop.eup %2459  ;;  %v1953_v61 = vpop.permute.xlu1 %1952  ;;  %v2110_v55 = vmul.f32 %v2458_v19, %v2450_v49 }
 0x330   : > { %v1892_v31 = vmul.f32 1.442695, %v1839_v6  ;;  %2463 = vrcp.f32 %v2044_v1  ;;  %v2045_v48 = vadd.f32 %v2460_v40, %v1953_v61  ;;  %v1636_v6 = vmul.f32 1.442695, %v1599_v51 }
 0x331   : > { %2210 = vrot.lane.b32.xlu1 %v2110_v55, %s2643_s11  ;;  %v2610_v55 = vld [vmem:[%s3538_s19 + $0x48] sm:$0xff] }
 0x332   : > { %v2462_v57 = vpop.eup %2461  ;;  %2465 = vpow2.f32 %v1892_v31  ;;  %v1603_v31 = vsub.f32 %v2610_v55, %v3866_v36 }
 0x333   : > { %2467 = vrcp.f32 %v2045_v48  ;;  %1980 = vrot.lane.b32.xlu0 %v2462_v57, %s2642_s13 }
 0x334   : > { %2469 = vpow2.f32 %v1640_v30  ;;  %v1644_v10 = vmul.f32 1.442695, %v1603_v31 }
 0x335   : > { %v1761_v24 = vpop.permute.xlu0 %1760  ;;  %2471 = vpow2.f32 %v1638_v28 }
 0x336   : > { %v2464_v3 = vpop.eup %2463  ;;  %v1837_v49 = vsub.f32 %v3808_v60, %v1761_v24 }
 0x337   : > { %v1763_v41 = vpop.permute.xlu1 %1762  ;;  %v2108_v14 = vmul.f32 %v2464_v3, %v2456_v26  ;;  %v2611_v3 = vld [vmem:[%s3538_s19 + $0x50] sm:$0xff] }
 0x338   : > { %v2466_v18 = vpop.eup %2465  ;;  %v1888_v52 = vmul.f32 1.442695, %v1837_v49  ;;  %v1838_v42 = vsub.f32 %v3820_v43, %v1763_v41  ;;  %v1604_v49 = vsub.f32 %v2611_v3, %v3878_v8 }
 0x339   : > { %v2468_v21 = vpop.eup %2467  ;;  %1988 = vrot.lane.b32.xlu1 %v2466_v18, %s2642_s13  ;;  %2206 = vrot.lane.b32.xlu2 %v2108_v14, %s2643_s11 }
 0x33a   : > { %2473 = vpow2.f32 %v1888_v52  ;;  %v1890_v19 = vmul.f32 1.442695, %v1838_v42  ;;  %v2109_v60 = vmul.f32 %v2468_v21, %v2460_v40  ;;  %v2470_v4 = vpop.eup %2469  ;;  %v1646_v42 = vmul.f32 1.442695, %v1604_v49 }
 0x33b   : > { %v2472_v63 = vpop.eup %2471 }
 0x33c   : > { %2475 = vpow2.f32 %v1890_v19  ;;  %2208 = vrot.lane.b32.xlu0 %v2109_v60, %s2643_s11  ;;  %v2612_v60 = vld [vmem:[%s3538_s19 + $0x40] sm:$0xff] }
 0x33d   : > { %v1961_v26 = vpop.permute.xlu2 %1960  ;;  %2477 = vpow2.f32 %v1636_v6  ;;  %v1602_v6 = vsub.f32 %v2612_v60, %v3854_v16 }
 0x33e   : > { %v2049_v1 = vadd.f32 %v2470_v4, %v1961_v26 }
 0x33f   : > { %v1959_v43 = vpop.permute.xlu1 %1958 }
 0x340   : > { %v2474_v54 = vpop.eup %2473  ;;  %2479 = vrcp.f32 %v2049_v1  ;;  %v2048_v61 = vadd.f32 %v2472_v63, %v1959_v43 }
 0x341   : > { %1984 = vrot.lane.b32.xlu2 %v2474_v54, %s2642_s13  ;;  %v1642_v54 = vmul.f32 1.442695, %v1602_v6 }
 0x342   : > { %v2476_v40 = vpop.eup %2475  ;;  %2481 = vrcp.f32 %v2048_v61 }
 0x343   : > { %v2478_v48 = vpop.eup %2477 }
 0x344   : > { %1986 = vrot.lane.b32.xlu0 %v2476_v40, %s2642_s13 }
 0x345   : > { %v1771_v22 = vpop.permute.xlu2 %1770  ;;  %v1957_v57 = vpop.permute.xlu0 %1956 }
 0x346   : > { %v2480_v30 = vpop.eup %2479  ;;  %v1842_v28 = vsub.f32 %v3868_v53, %v1771_v22  ;;  %v2047_v24 = vadd.f32 %v2478_v48, %v1957_v57 }
 0x347   : > { %v1769_v45 = vpop.permute.xlu1 %1768  ;;  %v2113_v51 = vmul.f32 %v2480_v30, %v2470_v4 }
 0x348   : > { %v2482_v36 = vpop.eup %2481  ;;  %v1898_v41 = vmul.f32 1.442695, %v1842_v28  ;;  %2483 = vrcp.f32 %v2047_v24  ;;  %v1841_v14 = vsub.f32 %v3856_v58, %v1769_v45 }
 0x349   : > { %2485 = vpow2.f32 %v1644_v10  ;;  %2216 = vrot.lane.b32.xlu1 %v2113_v51, %s2643_s11  ;;  %v2112_v18 = vmul.f32 %v2482_v36, %v2472_v63  ;;  %v2613_v36 = vld [vmem:[%s3538_s19 + $0x60] sm:$0xff] }
 0x34a   : > { %2487 = vpow2.f32 %v1898_v41  ;;  %v1896_v52 = vmul.f32 1.442695, %v1841_v14  ;;  %v1606_v41 = vsub.f32 %v2613_v36, %v3902_v32 }
 0x34c   : > { %2489 = vpow2.f32 %v1896_v52  ;;  %2214 = vrot.lane.b32.xlu0 %v2112_v18, %s2643_s11 }
 0x34d   : > { %v1767_v53 = vpop.permute.xlu0 %1766  ;;  %2491 = vpow2.f32 %v1646_v42 }
 0x34e   : > { %v2484_v8 = vpop.eup %2483  ;;  %v1840_v21 = vsub.f32 %v3844_v56, %v1767_v53 }
 0x34f   : > { %v2486_v19 = vpop.eup %2485  ;;  %v1965_v58 = vpop.permute.xlu1 %1964  ;;  %v2111_v4 = vmul.f32 %v2484_v8, %v2478_v48 }
 0x350   : > { %v2488_v26 = vpop.eup %2487  ;;  %v1894_v1 = vmul.f32 1.442695, %v1840_v21  ;;  %v2051_v63 = vadd.f32 %v2486_v19, %v1965_v58 }
 0x351   : > { %1994 = vrot.lane.b32.xlu1 %v2488_v26, %s2642_s13  ;;  %2212 = vrot.lane.b32.xlu2 %v2111_v4, %s2643_s11  ;;  %v2615_v26 = vld [vmem:[%s3538_s19 + $0x78] sm:$0xff] }
 0x352   : > { %v2490_v43 = vpop.eup %2489  ;;  %2493 = vpow2.f32 %v1894_v1  ;;  %v1609_v1 = vsub.f32 %v2615_v26, %v3941_v37  ;;  %v2620_v26 = vld [vmem:[%s3538_s19 + $0x70] sm:$0xff] }
 0x353   : > { %2495 = vrcp.f32 %v2051_v63  ;;  %v2492_v56 = vpop.eup %2491 }
 0x354   : > { %1992 = vrot.lane.b32.xlu0 %v2490_v43, %s2642_s13  ;;  %2497 = vpow2.f32 %v1642_v54 }
 0x355   : > { %v1967_v61 = vpop.permute.xlu2 %1966 }
 0x356   : > { %v2052_v55 = vadd.f32 %v2492_v56, %v1967_v61 }
 0x357   : > { %v1775_v16 = vpop.permute.xlu1 %1774 }
 0x358   : > { %v2494_v31 = vpop.eup %2493  ;;  %2499 = vrcp.f32 %v2052_v55  ;;  %v1844_v40 = vsub.f32 %v3892_v11, %v1775_v16  ;;  %v2616_v55 = vld [vmem:[%s3538_s19 + $0x80] sm:$0xff] }
 0x359   : > { %v2496_v48 = vpop.eup %2495  ;;  %1990 = vrot.lane.b32.xlu2 %v2494_v31, %s2642_s13  ;;  %v1610_v16 = vsub.f32 %v2616_v55, %v3952_v44 }
 0x35a   : > { %v1902_v10 = vmul.f32 1.442695, %v1844_v40  ;;  %v2115_v22 = vmul.f32 %v2496_v48, %v2486_v19  ;;  %v2498_v57 = vpop.eup %2497  ;;  %v2614_v19 = vld [vmem:[%s3538_s19 + $0x68] sm:$0xff] }
 0x35b   : > { %v1607_v32 = vsub.f32 %v2614_v19, %v3916_v34 }
 0x35c   : > { %2501 = vpow2.f32 %v1902_v10  ;;  %2220 = vrot.lane.b32.xlu0 %v2115_v22, %s2643_s11  ;;  %v1658_v10 = vmul.f32 1.442695, %v1610_v16 }
 0x35d   : > { %v1777_v30 = vpop.permute.xlu2 %1776  ;;  %v1963_v28 = vpop.permute.xlu0 %1962 }
 0x35e   : > { %v2500_v24 = vpop.eup %2499  ;;  %v1845_v3 = vsub.f32 %v3904_v9, %v1777_v30  ;;  %v2050_v49 = vadd.f32 %v2498_v57, %v1963_v28  ;;  %v1650_v9 = vmul.f32 1.442695, %v1606_v41 }
 0x35f   : > { %v2116_v45 = vmul.f32 %v2500_v24, %v2492_v56  ;;  %v1656_v56 = vmul.f32 1.442695, %v1609_v1  ;;  %v1608_v1 = vsub.f32 %v2620_v26, %v3928_v27 }
 0x360   : > { %v1904_v51 = vmul.f32 1.442695, %v1845_v3  ;;  %2503 = vrcp.f32 %v2050_v49 }
 0x361   : > { %2222 = vrot.lane.b32.xlu1 %v2116_v45, %s2643_s11 }
 0x362   : > { %v2502_v11 = vpop.eup %2501  ;;  %2505 = vpow2.f32 %v1904_v51  ;;  %v2617_v51 = vld [vmem:[%s3538_s19 + $0x90] sm:$0xff] }
 0x364   : > { %1998 = vrot.lane.b32.xlu0 %v2502_v11, %s2642_s13  ;;  %v1612_v11 = vsub.f32 %v2617_v51, %v3971_v62 }
 0x365   : > { %v1971_v14 = vpop.permute.xlu1 %1970  ;;  %v1773_v18 = vpop.permute.xlu0 %1772 }
 0x366   : > { %v2504_v52 = vpop.eup %2503  ;;  %v1843_v42 = vsub.f32 %v3880_v25, %v1773_v18  ;;  %v1652_v25 = vmul.f32 1.442695, %v1607_v32 }
 0x367   : > { %v2114_v53 = vmul.f32 %v2504_v52, %v2498_v57 }
 0x368   : > { %v2506_v8 = vpop.eup %2505  ;;  %v1900_v21 = vmul.f32 1.442695, %v1843_v42  ;;  %v1662_v42 = vmul.f32 1.442695, %v1612_v11 }
 0x369   : > { %2000 = vrot.lane.b32.xlu1 %v2506_v8, %s2642_s13  ;;  %2218 = vrot.lane.b32.xlu2 %v2114_v53, %s2643_s11  ;;  %v2618_v53 = vld [vmem:[%s3538_s19 + $0x58] sm:$0xff] }
 0x36a   : > { %2507 = vpow2.f32 %v1900_v21  ;;  %v1605_v8 = vsub.f32 %v2618_v53, %v3890_v59  ;;  %v2619_v21 = vld [vmem:[%s3538_s19 + $0x98] sm:$0xff] }
 0x36b   : > { %2509 = vpow2.f32 %v1650_v9  ;;  %v1613_v19 = vsub.f32 %v2619_v21, %v3979_v15 }
 0x36d   : > { %v1781_v60 = vpop.permute.xlu1 %1780  ;;  %v1973_v6 = vpop.permute.xlu2 %1972 }
 0x36e   : > { %v1847_v58 = vsub.f32 %v3930_v29, %v1781_v60 }
 0x370   : > { %v2508_v4 = vpop.eup %2507  ;;  %v1908_v63 = vmul.f32 1.442695, %v1847_v58 }
 0x371   : > { %v2510_v43 = vpop.eup %2509  ;;  %1996 = vrot.lane.b32.xlu2 %v2508_v4, %s2642_s13 }
 0x372   : > { %v2054_v54 = vadd.f32 %v2510_v43, %v1971_v14  ;;  %2511 = vpow2.f32 %v1908_v63 }
 0x373   : > { %2513 = vpow2.f32 %v1652_v25  ;;  %v1664_v25 = vmul.f32 1.442695, %v1613_v19 }
 0x374   : > { %2515 = vrcp.f32 %v2054_v54 }
 0x375   : > { %v1783_v61 = vpop.permute.xlu2 %1782  ;;  %v4130_v34 = vpop.permute.xlu0 %1968  ;;  %2517 = vpow2.f32 %v1656_v56  ;;  %v1654_v56 = vmul.f32 1.442695, %v1608_v1 }
 0x376   : > { %v1848_v29 = vsub.f32 %v3938_v35, %v1783_v61 }
 0x378   : > { %v2512_v31 = vpop.eup %2511  ;;  %v1910_v37 = vmul.f32 1.442695, %v1848_v29 }
 0x379   : > { %v2514_v40 = vpop.eup %2513  ;;  %2004 = vrot.lane.b32.xlu0 %v2512_v31, %s2642_s13  ;;  %v2621_v31 = vld [vmem:[%s3538_s19 + $0x88] sm:$0xff] }
 0x37a   : > { %v2055_v48 = vadd.f32 %v2514_v40, %v1973_v6  ;;  %2519 = vpow2.f32 %v1910_v37  ;;  %v2516_v22 = vpop.eup %2515  ;;  %v1648_v6 = vmul.f32 1.442695, %v1605_v8  ;;  %v1611_v27 = vsub.f32 %v2621_v31, %v3966_v39 }
 0x37b   : > { %v2518_v30 = vpop.eup %2517  ;;  %v2118_v44 = vmul.f32 %v2516_v22, %v2510_v43  ;;  %v2622_v22 = vld [vmem:[%s3538_s19 + $0xa8] sm:$0xff] }
 0x37c   : > { %2521 = vrcp.f32 %v2055_v48 }
 0x37d   : > { %v1779_v57 = vpop.permute.xlu0 %1778  ;;  %2523 = vpow2.f32 %v1658_v10 }
 0x37e   : > { %v1977_v28 = vpop.permute.xlu1 %1976  ;;  %v1846_v35 = vsub.f32 %v3918_v0, %v1779_v57  ;;  %v1615_v57 = vsub.f32 %v2622_v22, %v3994_v2 }
 0x37f   : > { %v2057_v24 = vadd.f32 %v2518_v30, %v1977_v28 }
 0x380   : > { %v2520_v3 = vpop.eup %2519  ;;  %v1906_v49 = vmul.f32 1.442695, %v1846_v35  ;;  %v1668_v28 = vmul.f32 1.442695, %v1615_v57 }
 0x381   : > { %2525 = vrcp.f32 %v2057_v24  ;;  %2226 = vrot.lane.b32.xlu0 %v2118_v44, %s2643_s11  ;;  %2006 = vrot.lane.b32.xlu1 %v2520_v3, %s2642_s13  ;;  %v2623_v3 = vld [vmem:[%s3538_s19 + $0xb0] sm:$0xff] }
 0x382   : > { %2527 = vpow2.f32 %v1906_v49  ;;  %v2522_v45 = vpop.eup %2521  ;;  %v1616_v49 = vsub.f32 %v2623_v3, %v4005_v7 }
 0x383   : > { %v2524_v36 = vpop.eup %2523  ;;  %v2119_v18 = vmul.f32 %v2522_v45, %v2514_v40 }
 0x385   : > { %v1979_v41 = vpop.permute.xlu2 %1978 }
 0x386   : > { %v2058_v0 = vadd.f32 %v2524_v36, %v1979_v41  ;;  %v2624_v41 = vld [vmem:[%s3538_s19 + $0xa0] sm:$0xff] }
 0x387   : > { %v2526_v14 = vpop.eup %2525 }
 0x388   : > { %v2528_v52 = vpop.eup %2527  ;;  %2529 = vrcp.f32 %v2058_v0  ;;  %v2121_v9 = vmul.f32 %v2526_v14, %v2518_v30  ;;  %v1660_v30 = vmul.f32 1.442695, %v1611_v27  ;;  %v1614_v0 = vsub.f32 %v2624_v41, %v3983_v23 }
 0x389   : > { %2228 = vrot.lane.b32.xlu1 %v2119_v18, %s2643_s11  ;;  %2002 = vrot.lane.b32.xlu2 %v2528_v52, %s2642_s13  ;;  %2531 = vpow2.f32 %v1662_v42  ;;  %v1670_v14 = vmul.f32 1.442695, %v1616_v49 }
 0x38a   : > { %2232 = vrot.lane.b32.xlu0 %v2121_v9, %s2643_s11  ;;  %2533 = vpow2.f32 %v1648_v6  ;;  %v1666_v53 = vmul.f32 1.442695, %v1614_v0 }
 0x38b   : > { %v2205_v62 = vpop.permute.xlu1 %2204  ;;  %2535 = vpow2.f32 %v1664_v25 }
 0x38c   : > { %2300 = vst.msk [vmem:[%s3538_s19 + $0x8] sm:$0xff] %vm2298_vm0, %v2205_v62 }
 0x38d   : > { %v1975_v32 = vpop.permute.xlu0 %1974 }
 0x38e   : > { %v2530_v60 = vpop.eup %2529 }
 0x38f   : > { %v2122_v58 = vmul.f32 %v2530_v60, %v2524_v36  ;;  %v2532_v4 = vpop.eup %2531 }
 0x390   : > { %v2534_v61 = vpop.eup %2533 }
 0x391   : > { %2234 = vrot.lane.b32.xlu1 %v2122_v58, %s2643_s11  ;;  %v2053_v55 = vadd.f32 %v2534_v61, %v4130_v34  ;;  %v2536_v16 = vpop.eup %2535  ;;  %v2625_v58 = vld [vmem:[%s3538_s19 + $0xc0] sm:$0xff] }
 0x392   : > { %v1618_v25 = vsub.f32 %v2625_v58, %v4020_v38 }
 0x393   : > { %v1983_v59 = vpop.permute.xlu1 %1982  ;;  %v2207_v43 = vpop.permute.xlu2 %2206 }
 0x394   : > { %v2060_v63 = vadd.f32 %v2532_v4, %v1983_v59  ;;  %2301 = vst.msk [vmem:[%s3538_s19 + $0x10] sm:$0xff] %vm2298_vm0, %v2207_v43  ;;  %v2626_v43 = vld [vmem:[%s3538_s19 + $0xb8] sm:$0xff] }
 0x395   : > { %v1785_v15 = vpop.permute.xlu0 %1784 }
 0x396   : > { %2537 = vrcp.f32 %v2060_v63  ;;  %v1849_v54 = vsub.f32 %v3954_v5, %v1785_v15  ;;  %v1617_v15 = vsub.f32 %v2626_v43, %v3997_v20 }
 0x398   : > { %v1912_v29 = vmul.f32 1.442695, %v1849_v54  ;;  %v1674_v54 = vmul.f32 1.442695, %v1618_v25  ;;  %v2632_v25 = vld [vmem:[%s3538_s19 + $0xf0] sm:$0xff] }
 0x39a   : > { %2539 = vpow2.f32 %v1912_v29  ;;  %v2627_v29 = vld [vmem:[%s3538_s19 + $0xc8] sm:$0xff] }
 0x39b   : > { %2541 = vpow2.f32 %v1654_v56  ;;  %v1985_v40 = vpop.permute.xlu2 %1984 }
 0x39c   : > { %v2538_v37 = vpop.eup %2537  ;;  %v2061_v48 = vadd.f32 %v2536_v16, %v1985_v40  ;;  %2543 = vrcp.f32 %v2053_v55  ;;  %v1619_v55 = vsub.f32 %v2627_v29, %v4026_v46 }
 0x39d   : > { %v2124_v10 = vmul.f32 %v2538_v37, %v2532_v4  ;;  %v2203_v5 = vpop.permute.xlu0 %2202 }
 0x39e   : > { %2545 = vrcp.f32 %v2061_v48  ;;  %2299 = vst.msk [vmem:[%s3538_s19] sm:$0xff] %vm2298_vm0, %v2203_v5  ;;  %v1676_v37 = vmul.f32 1.442695, %v1619_v55 }
 0x39f   : > { %2238 = vrot.lane.b32.xlu0 %v2124_v10, %s2643_s11  ;;  %2547 = vpow2.f32 %v1660_v30  ;;  %v2628_v30 = vld [vmem:[%s3538_s19 + $0xd0] sm:$0xff] }
 0x3a0   : > { %v2540_v39 = vpop.eup %2539  ;;  %2549 = vpow2.f32 %v1668_v28 }
 0x3a1   : > { %v2542_v34 = vpop.eup %2541  ;;  %2008 = vrot.lane.b32.xlu2 %v2540_v39, %s2642_s13  ;;  %v1620_v39 = vsub.f32 %v2628_v30, %v4013_v12 }
 0x3a2   : > { %v2056_v35 = vadd.f32 %v2542_v34, %v1975_v32  ;;  %v2544_v24 = vpop.eup %2543 }
 0x3a3   : > { %v2211_v2 = vpop.permute.xlu1 %2210  ;;  %v2117_v11 = vmul.f32 %v2544_v24, %v2534_v61  ;;  %v1672_v61 = vmul.f32 1.442695, %v1617_v15  ;;  %v1678_v24 = vmul.f32 1.442695, %v1620_v39  ;;  %v2633_v15 = vld [vmem:[%s3538_s19 + $0xf8] sm:$0xff] }
 0x3a4   : > { %v2546_v44 = vpop.eup %2545  ;;  %2303 = vst.msk [vmem:[%s3538_s19 + $0x20] sm:$0xff] %vm2298_vm0, %v2211_v2  ;;  %2551 = vrcp.f32 %v2056_v35 }
 0x3a5   : > { %v1981_v45 = vpop.permute.xlu0 %1980  ;;  %v2125_v51 = vmul.f32 %v2546_v44, %v2536_v16  ;;  %v2548_v36 = vpop.eup %2547  ;;  %2553 = vpow2.f32 %v1670_v14  ;;  %v2629_v44 = vld [vmem:[%s3538_s19 + $0xd8] sm:$0xff] }
 0x3a6   : > { %v2059_v18 = vadd.f32 %v2548_v36, %v1981_v45  ;;  %v2550_v7 = vpop.eup %2549  ;;  %v1621_v3 = vsub.f32 %v2629_v44, %v4042_v47  ;;  %v2630_v47 = vld [vmem:[%s3538_s19 + $0xe0] sm:$0xff] }
 0x3a7   : > { %2240 = vrot.lane.b32.xlu1 %v2125_v51, %s2643_s11  ;;  %v1622_v0 = vsub.f32 %v2630_v47, %v4049_v13 }
 0x3a8   : > { %2555 = vrcp.f32 %v2059_v18 }
 0x3a9   : > { %2224 = vrot.lane.b32.xlu2 %v2117_v11, %s2643_s11  ;;  %v1680_v11 = vmul.f32 1.442695, %v1621_v3 }
 0x3aa   : > { %v2552_v9 = vpop.eup %2551 }
 0x3ab   : > { %v1989_v52 = vpop.permute.xlu1 %1988  ;;  %v2213_v42 = vpop.permute.xlu2 %2212  ;;  %v2120_v23 = vmul.f32 %v2552_v9, %v2542_v34 }
 0x3ac   : > { %v2063_v8 = vadd.f32 %v2550_v7, %v1989_v52  ;;  %2304 = vst.msk [vmem:[%s3538_s19 + $0x28] sm:$0xff] %vm2298_vm0, %v2213_v42  ;;  %v2554_v21 = vpop.eup %2553  ;;  %v1682_v42 = vmul.f32 1.442695, %v1622_v0 }
 0x3ae   : > { %2557 = vrcp.f32 %v2063_v8  ;;  %v2209_v62 = vpop.permute.xlu0 %2208  ;;  %v2556_v19 = vpop.eup %2555 }
 0x3af   : > { %2302 = vst.msk [vmem:[%s3538_s19 + $0x18] sm:$0xff] %vm2298_vm0, %v2209_v62  ;;  %2559 = vpow2.f32 %v1666_v53  ;;  %v2123_v63 = vmul.f32 %v2556_v19, %v2548_v36  ;;  %v2631_v62 = vld [vmem:[%s3538_s19 + $0xe8] sm:$0xff] }
 0x3b1   : > { %2230 = vrot.lane.b32.xlu2 %v2120_v23, %s2643_s11  ;;  %v1623_v23 = vsub.f32 %v2631_v62, %v4034_v33 }
 0x3b3   : > { %v1991_v32 = vpop.permute.xlu2 %1990  ;;  %v1684_v13 = vmul.f32 1.442695, %v1623_v23 }
 0x3b4   : > { %v2558_v60 = vpop.eup %2557  ;;  %v2064_v6 = vadd.f32 %v2554_v21, %v1991_v32 }
 0x3b5   : > { %v2127_v4 = vmul.f32 %v2558_v60, %v2550_v7  ;;  %v2560_v59 = vpop.eup %2559 }
 0x3b6   : > { %2561 = vrcp.f32 %v2064_v6  ;;  %v1987_v26 = vpop.permute.xlu0 %1986 }
 0x3b7   : > { %v2062_v1 = vadd.f32 %v2560_v59, %v1987_v26  ;;  %2244 = vrot.lane.b32.xlu0 %v2127_v4, %s2643_s11  ;;  %v1624_v4 = vsub.f32 %v2632_v25, %v4063_v50 }
 0x3b9   : > { %2563 = vrcp.f32 %v2062_v1  ;;  %2236 = vrot.lane.b32.xlu2 %v2123_v63, %s2643_s11  ;;  %v1686_v33 = vmul.f32 1.442695, %v1624_v4 }
 0x3ba   : > { %2565 = vpow2.f32 %v1674_v54  ;;  %v1625_v54 = vsub.f32 %v2633_v15, %v4072_v17 }
 0x3bb   : > { %v2217_v56 = vpop.permute.xlu1 %2216  ;;  %2567 = vpow2.f32 %v1672_v61 }
 0x3bc   : > { %v2562_v38 = vpop.eup %2561  ;;  %2306 = vst.msk [vmem:[%s3538_s19 + $0x38] sm:$0xff] %vm2298_vm0, %v2217_v56  ;;  %2569 = vpow2.f32 %v1676_v37  ;;  %v1688_v50 = vmul.f32 1.442695, %v1625_v54 }
 0x3bd   : > { %v2128_v16 = vmul.f32 %v2562_v38, %v2554_v21 }
 0x3be   : > { %v2215_v31 = vpop.permute.xlu0 %2214 }
 0x3bf   : > { %v2564_v27 = vpop.eup %2563  ;;  %2305 = vst.msk [vmem:[%s3538_s19 + $0x30] sm:$0xff] %vm2298_vm0, %v2215_v31  ;;  %2246 = vrot.lane.b32.xlu1 %v2128_v16, %s2643_s11 }
 0x3c0   : > { %v2126_v20 = vmul.f32 %v2564_v27, %v2560_v59  ;;  %v2566_v40 = vpop.eup %2565 }
 0x3c1   : > { %v2568_v46 = vpop.eup %2567 }
 0x3c2   : > { %2242 = vrot.lane.b32.xlu2 %v2126_v20, %s2643_s11  ;;  %v2570_v34 = vpop.eup %2569 }
 0x3c3   : > { %v1995_v48 = vpop.permute.xlu1 %1994  ;;  %v2219_v10 = vpop.permute.xlu2 %2218 }
 0x3c4   : > { %v2066_v22 = vadd.f32 %v2566_v40, %v1995_v48  ;;  %2307 = vst.msk [vmem:[%s3538_s19 + $0x40] sm:$0xff] %vm2298_vm0, %v2219_v10 }
 0x3c6   : > { %2571 = vrcp.f32 %v2066_v22  ;;  %v1993_v57 = vpop.permute.xlu0 %1992 }
 0x3c7   : > { %v2065_v5 = vadd.f32 %v2568_v46, %v1993_v57 }
 0x3c9   : > { %2573 = vrcp.f32 %v2065_v5 }
 0x3cb   : > { %v1997_v28 = vpop.permute.xlu2 %1996 }
 0x3cc   : > { %v2572_v35 = vpop.eup %2571  ;;  %v2067_v2 = vadd.f32 %v2570_v34, %v1997_v28 }
 0x3cd   : > { %v2130_v49 = vmul.f32 %v2572_v35, %v2566_v40 }
 0x3ce   : > { %2575 = vrcp.f32 %v2067_v2  ;;  %v2221_v45 = vpop.permute.xlu0 %2220 }
 0x3cf   : > { %v2574_v51 = vpop.eup %2573  ;;  %2308 = vst.msk [vmem:[%s3538_s19 + $0x48] sm:$0xff] %vm2298_vm0, %v2221_v45  ;;  %2250 = vrot.lane.b32.xlu0 %v2130_v49, %s2643_s11  ;;  %2577 = vpow2.f32 %v1678_v24 }
 0x3d0   : > { %v2129_v12 = vmul.f32 %v2574_v51, %v2568_v46  ;;  %2579 = vpow2.f32 %v1680_v11 }
 0x3d2   : > { %2248 = vrot.lane.b32.xlu2 %v2129_v12, %s2643_s11 }
 0x3d3   : > { %v2223_v36 = vpop.permute.xlu1 %2222 }
 0x3d4   : > { %v2576_v41 = vpop.eup %2575  ;;  %2309 = vst.msk [vmem:[%s3538_s19 + $0x50] sm:$0xff] %vm2298_vm0, %v2223_v36 }
 0x3d5   : > { %v2131_v14 = vmul.f32 %v2576_v41, %v2570_v34  ;;  %v2578_v18 = vpop.eup %2577 }
 0x3d6   : > { %v1999_v7 = vpop.permute.xlu0 %1998  ;;  %v2580_v9 = vpop.eup %2579 }
 0x3d7   : > { %v2068_v52 = vadd.f32 %v2578_v18, %v1999_v7  ;;  %2252 = vrot.lane.b32.xlu1 %v2131_v14, %s2643_s11 }
 0x3d9   : > { %2581 = vrcp.f32 %v2068_v52 }
 0x3da   : > { %2583 = vpow2.f32 %v1682_v42 }
 0x3db   : > { %v2001_v53 = vpop.permute.xlu1 %2000 }
 0x3dc   : > { %v2069_v8 = vadd.f32 %v2580_v9, %v2001_v53 }
 0x3de   : > { %2585 = vrcp.f32 %v2069_v8 }
 0x3df   : > { %v2582_v21 = vpop.eup %2581  ;;  %2587 = vpow2.f32 %v1684_v13 }
 0x3e0   : > { %v2132_v19 = vmul.f32 %v2582_v21, %v2578_v18  ;;  %v2584_v32 = vpop.eup %2583 }
 0x3e2   : > { %2254 = vrot.lane.b32.xlu2 %v2132_v19, %s2643_s11 }
 0x3e3   : > { %v2003_v60 = vpop.permute.xlu2 %2002 }
 0x3e4   : > { %v2586_v6 = vpop.eup %2585  ;;  %v2070_v58 = vadd.f32 %v2584_v32, %v2003_v60 }
 0x3e5   : > { %v2133_v59 = vmul.f32 %v2586_v6, %v2580_v9  ;;  %v2588_v26 = vpop.eup %2587 }
 0x3e6   : > { %2589 = vrcp.f32 %v2070_v58 }
 0x3e7   : > { %2256 = vrot.lane.b32.xlu0 %v2133_v59, %s2643_s11  ;;  %2591 = vpow2.f32 %v1686_v33 }
 0x3eb   : > { %v2005_v1 = vpop.permute.xlu0 %2004 }
 0x3ec   : > { %v2590_v63 = vpop.eup %2589  ;;  %v2071_v43 = vadd.f32 %v2588_v26, %v2005_v1 }
 0x3ed   : > { %v2134_v56 = vmul.f32 %v2590_v63, %v2584_v32  ;;  %v2592_v38 = vpop.eup %2591 }
 0x3ee   : > { %2593 = vrcp.f32 %v2071_v43 }
 0x3ef   : > { %2258 = vrot.lane.b32.xlu1 %v2134_v56, %s2643_s11  ;;  %2595 = vpow2.f32 %v1688_v50 }
 0x3f3   : > { %v2007_v61 = vpop.permute.xlu1 %2006  ;;  %v2227_v29 = vpop.permute.xlu0 %2226 }
 0x3f4   : > { %v2594_v55 = vpop.eup %2593  ;;  %v2072_v16 = vadd.f32 %v2592_v38, %v2007_v61  ;;  %2311 = vst.msk [vmem:[%s3538_s19 + $0x60] sm:$0xff] %vm2298_vm0, %v2227_v29 }
 0x3f5   : > { %v2135_v31 = vmul.f32 %v2594_v55, %v2588_v26  ;;  %v2596_v17 = vpop.eup %2595 }
 0x3f6   : > { %2597 = vrcp.f32 %v2072_v16 }
 0x3f7   : > { %2260 = vrot.lane.b32.xlu2 %v2135_v31, %s2643_s11 }
 0x3fb   : > { %v2229_v27 = vpop.permute.xlu1 %2228  ;;  %v2009_v20 = vpop.permute.xlu2 %2008 }
 0x3fc   : > { %v2598_v37 = vpop.eup %2597  ;;  %2312 = vst.msk [vmem:[%s3538_s19 + $0x68] sm:$0xff] %vm2298_vm0, %v2229_v27  ;;  %v2073_v40 = vadd.f32 %v2596_v17, %v2009_v20  ;;  %v2233_v48 = vpop.permute.xlu0 %2232 }
 0x3fd   : > { %2314 = vst.msk [vmem:[%s3538_s19 + $0x78] sm:$0xff] %vm2298_vm0, %v2233_v48  ;;  %v2136_v10 = vmul.f32 %v2598_v37, %v2592_v38 }
 0x3fe   : > { %2599 = vrcp.f32 %v2073_v40 }
 0x3ff   : > { %2262 = vrot.lane.b32.xlu0 %v2136_v10, %s2643_s11 }
 0x403   : > { %v2235_v22 = vpop.permute.xlu1 %2234  ;;  %v2225_v46 = vpop.permute.xlu2 %2224 }
 0x404   : > { %v2600_v57 = vpop.eup %2599  ;;  %2315 = vst.msk [vmem:[%s3538_s19 + $0x80] sm:$0xff] %vm2298_vm0, %v2235_v22 }
 0x405   : > { %2310 = vst.msk [vmem:[%s3538_s19 + $0x58] sm:$0xff] %vm2298_vm0, %v2225_v46  ;;  %v2137_v5 = vmul.f32 %v2600_v57, %v2596_v17 }
 0x407   : > { %2264 = vrot.lane.b32.xlu1 %v2137_v5, %s2643_s11 }
 0x40b   : > { %v2231_v30 = vpop.permute.xlu2 %2230 }
 0x40c   : > { %2313 = vst.msk [vmem:[%s3538_s19 + $0x70] sm:$0xff] %vm2298_vm0, %v2231_v30 }
 0x411   : > { %v2239_v39 = vpop.permute.xlu0 %2238 }
 0x412   : > { %2317 = vst.msk [vmem:[%s3538_s19 + $0x90] sm:$0xff] %vm2298_vm0, %v2239_v39 }
 0x413   : > { %v2237_v34 = vpop.permute.xlu2 %2236 }
 0x414   : > { %2316 = vst.msk [vmem:[%s3538_s19 + $0x88] sm:$0xff] %vm2298_vm0, %v2237_v34 }
 0x419   : > { %v2241_v28 = vpop.permute.xlu1 %2240 }
 0x41a   : > { %2318 = vst.msk [vmem:[%s3538_s19 + $0x98] sm:$0xff] %vm2298_vm0, %v2241_v28 }
 0x41c   : > { %v2243_v35 = vpop.permute.xlu2 %2242 }
 0x41d   : > { %2319 = vst.msk [vmem:[%s3538_s19 + $0xa0] sm:$0xff] %vm2298_vm0, %v2243_v35 }
 0x429   : > { %v2245_v24 = vpop.permute.xlu0 %2244 }
 0x42a   : > { %2320 = vst.msk [vmem:[%s3538_s19 + $0xa8] sm:$0xff] %vm2298_vm0, %v2245_v24 }
 0x42c   : > { %v2249_v2 = vpop.permute.xlu2 %2248 }
 0x42d   : > { %2322 = vst.msk [vmem:[%s3538_s19 + $0xb8] sm:$0xff] %vm2298_vm0, %v2249_v2 }
 0x431   : > { %v2247_v44 = vpop.permute.xlu1 %2246 }
 0x432   : > { %2321 = vst.msk [vmem:[%s3538_s19 + $0xb0] sm:$0xff] %vm2298_vm0, %v2247_v44 }
 0x43c   : > { %v2255_v3 = vpop.permute.xlu2 %2254 }
 0x43d   : > { %2325 = vst.msk [vmem:[%s3538_s19 + $0xd0] sm:$0xff] %vm2298_vm0, %v2255_v3 }
 0x441   : > { %v2251_v49 = vpop.permute.xlu0 %2250 }
 0x442   : > { %2323 = vst.msk [vmem:[%s3538_s19 + $0xc0] sm:$0xff] %vm2298_vm0, %v2251_v49 }
 0x449   : > { %v2253_v45 = vpop.permute.xlu1 %2252 }
 0x44a   : > { %2324 = vst.msk [vmem:[%s3538_s19 + $0xc8] sm:$0xff] %vm2298_vm0, %v2253_v45 }
 0x451   : > { %v2261_v51 = vpop.permute.xlu2 %2260 }
 0x452   : > { %2328 = vst.msk [vmem:[%s3538_s19 + $0xe8] sm:$0xff] %vm2298_vm0, %v2261_v51 }
 0x459   : > { %v2257_v12 = vpop.permute.xlu0 %2256 }
 0x45a   : > { %2326 = vst.msk [vmem:[%s3538_s19 + $0xd8] sm:$0xff] %vm2298_vm0, %v2257_v12 }
 0x461   : > { %v2259_v11 = vpop.permute.xlu1 %2258 }
 0x462   : > { %2327 = vst.msk [vmem:[%s3538_s19 + $0xe0] sm:$0xff] %vm2298_vm0, %v2259_v11 }
 0x471   : > { %v2263_v36 = vpop.permute.xlu0 %2262 }
 0x472   : > { %2329 = vst.msk [vmem:[%s3538_s19 + $0xf0] sm:$0xff] %vm2298_vm0, %v2263_v36 }
 0x479   : > { %v2265_v41 = vpop.permute.xlu1 %2264 }
 0x47a   : > { %2330 = vst.msk [vmem:[%s3538_s19 + $0xf8] sm:$0xff] %vm2298_vm0, %v2265_v41 }
 0x47b PF: > { %s15_s18 = sadd.s32 1, %s2640_s18  }
 0x47c   : > { %p12_p4 = scmp.ge.s32.totalorder %s15_s18, 4  }
 0x47e   :  { %14 = sbr.rel (!%p12_p4) target bundleno = 1 (0x1), region = 70 }

</bundles_post_ra>
